<compile_context>
chip_gen: v5e
topology: v5e:2x2
jax: 0.10.0
libtpu: 0.0.40
codegen_flags: <defaults>
</compile_context>

<pallas_src>
import math
import functools

import jax
import jax.numpy as jnp
from jax.experimental import pallas as pl
from jax.experimental.pallas import tpu as pltpu

_VMEM_LIMIT = 48 * 1024 * 1024  # scoped-VMEM budget; safe on v5e/v6e (128 MiB) and v7x (64 MiB)


def _choose_tile(dim, target, align):
    """Largest divisor of `dim` that is <= target and a multiple of `align`, else `dim`."""
    if dim <= target:
        return dim
    t = (target // align) * align
    while t >= align:
        if dim % t == 0:
            return t
        t -= align
    # TODO(synk): truly ragged dims fall back to one full block; the only ragged dim in
    # this model (vocab) is padded to a multiple of 128 at init, so this path stays small.
    return dim


def _round_up(x, m):
    return ((x + m - 1) // m) * m


# ------------------- tiled linear, full-K, bias (+ReLU) fused -------------------

def _linear_kernel(x_ref, w_ref, b_ref, o_ref, *, relu):
    y = jnp.dot(x_ref[...], w_ref[...], preferred_element_type=jnp.float32) + b_ref[...]
    if relu:
        y = jnp.maximum(y, 0.0)
    o_ref[...] = y.astype(o_ref.dtype)


def linear(x, w_t, b, *, relu=False, out_dtype=jnp.bfloat16, tm=512, tn=768):
    """y = x @ w_t + b; w_t is (Din, Dout) bf16. Full-K, tiled over (M, N).

    Grid is (n, m) with m innermost so the (K, tn) weight tile stays VMEM-resident
    across the inner loop (DMA'd once); x tiles are streamed N/tn times.
    """
    M, K = x.shape
    Kw, N = w_t.shape
    assert K == Kw
    if x.dtype != jnp.bfloat16:
        x = x.astype(jnp.bfloat16)
    tm = _choose_tile(M, tm, 16)      # 16-row alignment: bf16 packs 16 rows per vreg
    tn = _choose_tile(N, tn, 128)
    grid = (N // tn, M // tm)         # m innermost -> weight-resident
    return pl.pallas_call(
        functools.partial(_linear_kernel, relu=relu),
        out_shape=jax.ShapeDtypeStruct((M, N), out_dtype),
        grid=grid,
        in_specs=[
            pl.BlockSpec((tm, K), lambda j, i: (i, 0)),
            pl.BlockSpec((K, tn), lambda j, i: (0, j)),
            pl.BlockSpec((1, tn), lambda j, i: (0, j)),
        ],
        out_specs=pl.BlockSpec((tm, tn), lambda j, i: (i, j)),
        compiler_params=pltpu.CompilerParams(
            dimension_semantics=("parallel", "parallel"),
            vmem_limit_bytes=_VMEM_LIMIT),
    )(x, w_t, b.reshape(1, N).astype(jnp.float32))


# --------- tiled linear + residual + LayerNorm (fused epilogue, full-K/full-N) ---------

def _linear_add_ln_kernel(x_ref, w_ref, b_ref, r_ref, g_ref, bb_ref, o_ref, *, eps):
    h = (jnp.dot(x_ref[...], w_ref[...], preferred_element_type=jnp.float32)
         + b_ref[...] + r_ref[...].astype(jnp.float32))
    mean = jnp.mean(h, axis=-1, keepdims=True)
    var = jnp.mean(jnp.square(h - mean), axis=-1, keepdims=True)
    y = (h - mean) * jax.lax.rsqrt(var + eps) * g_ref[...] + bb_ref[...]
    o_ref[...] = y.astype(o_ref.dtype)


def linear_add_layernorm(x, w_t, b, res, gamma, beta, *, out_dtype=jnp.bfloat16,
                         tm=512, eps=1e-5):
    """LayerNorm(res + (x @ w_t + b)); LN over the full N (= d_model) axis.

    The (K, N) weight block has a constant index, so it is DMA'd once and stays
    VMEM-resident for the whole grid.
    """
    M, K = x.shape
    Kw, N = w_t.shape
    assert K == Kw and res.shape == (M, N)
    if x.dtype != jnp.bfloat16:
        x = x.astype(jnp.bfloat16)
    tm = _choose_tile(M, tm, 16)
    grid = (M // tm,)
    return pl.pallas_call(
        functools.partial(_linear_add_ln_kernel, eps=eps),
        out_shape=jax.ShapeDtypeStruct((M, N), out_dtype),
        grid=grid,
        in_specs=[
            pl.BlockSpec((tm, K), lambda i: (i, 0)),
            pl.BlockSpec((K, N), lambda i: (0, 0)),
            pl.BlockSpec((1, N), lambda i: (0, 0)),
            pl.BlockSpec((tm, N), lambda i: (i, 0)),
            pl.BlockSpec((1, N), lambda i: (0, 0)),
            pl.BlockSpec((1, N), lambda i: (0, 0)),
        ],
        out_specs=pl.BlockSpec((tm, N), lambda i: (i, 0)),
        compiler_params=pltpu.CompilerParams(
            dimension_semantics=("parallel",),
            vmem_limit_bytes=_VMEM_LIMIT),
    )(x, w_t, b.reshape(1, N).astype(jnp.float32), res,
      gamma.reshape(1, N).astype(jnp.float32),
      beta.reshape(1, N).astype(jnp.float32))


# ------------- flash-style multi-head self-attention: grid = (B, H, kv blocks) -------------

def _flash_attn_kernel(q_ref, k_ref, v_ref, bias_ref, o_ref, m_sc, l_sc, acc_sc):
    kv = pl.program_id(2)

    @pl.when(kv == 0)
    def _():
        m_sc[...] = jnp.full(m_sc.shape, -jnp.inf, m_sc.dtype)
        l_sc[...] = jnp.zeros(l_sc.shape, l_sc.dtype)
        acc_sc[...] = jnp.zeros(acc_sc.shape, acc_sc.dtype)

    q = q_ref[0, 0]          # (S, hd) bf16; 1/sqrt(hd) already folded into in_proj weights
    k = k_ref[0, 0]          # (Tkv, hd) bf16
    v = v_ref[0, 0]          # (Tkv, hd) bf16
    # Contract last dims directly -> no in-kernel k.T (XLU transpose).
    s = jax.lax.dot_general(q, k, (((1,), (1,)), ((), ())),
                            preferred_element_type=jnp.float32)        # (S, Tkv)
    s = s + bias_ref[0]                                                # key-padding bias
    m_prev = m_sc[...]
    m_new = jnp.maximum(m_prev, jnp.max(s, axis=-1, keepdims=True))
    alpha = jnp.exp(m_prev - m_new)
    p = jnp.exp(s - m_new)
    l_sc[...] = alpha * l_sc[...] + jnp.sum(p, axis=-1, keepdims=True)
    acc_sc[...] = alpha * acc_sc[...] + jnp.dot(p.astype(v.dtype), v,
                                                preferred_element_type=jnp.float32)
    m_sc[...] = m_new

    @pl.when(kv == pl.num_programs(2) - 1)
    def _():
        o_ref[0, 0] = (acc_sc[...] *
                       pl.reciprocal(l_sc[...], approx=True)).astype(o_ref.dtype)


def multihead_attention(q, k, v, mask_bias, *, tkv_target=512):
    """q, k, v: (B, H, S, hd) bf16; mask_bias: (B, 1, S) f32. Returns (B, H, S, hd) bf16."""
    B, H, S, hd = q.shape
    tkv = _choose_tile(S, tkv_target, 128)
    # TODO(synk): for very long S (> a few K) also tile the query axis on the grid.
    grid = (B, H, S // tkv)
    return pl.pallas_call(
        _flash_attn_kernel,
        out_shape=jax.ShapeDtypeStruct((B, H, S, hd), jnp.bfloat16),
        grid_spec=pltpu.PrefetchScalarGridSpec(
            num_scalar_prefetch=0,
            grid=grid,
            in_specs=[
                pl.BlockSpec((1, 1, S, hd), lambda b, h, kv: (b, h, 0, 0)),
                pl.BlockSpec((1, 1, tkv, hd), lambda b, h, kv: (b, h, kv, 0)),
                pl.BlockSpec((1, 1, tkv, hd), lambda b, h, kv: (b, h, kv, 0)),
                pl.BlockSpec((1, 1, tkv), lambda b, h, kv: (b, 0, kv)),
            ],
            out_specs=pl.BlockSpec((1, 1, S, hd), lambda b, h, kv: (b, h, 0, 0)),
            scratch_shapes=[pltpu.VMEM((S, 1), jnp.float32),     # running max
                            pltpu.VMEM((S, 1), jnp.float32),     # running denom
                            pltpu.VMEM((S, hd), jnp.float32)],   # running output
        ),
        compiler_params=pltpu.CompilerParams(
            dimension_semantics=("parallel", "parallel", "arbitrary"),
            vmem_limit_bytes=_VMEM_LIMIT),
    )(q, k, v, mask_bias)


# ---------------------------- parameters ----------------------------

def init_params(key, vocab_size, d_model, n_layers, heads, dim_ff=2048, max_len=5000):
    hd = d_model // heads
    attn_scale = 1.0 / math.sqrt(hd)
    vocab_pad = _round_up(max(vocab_size, 128), 128)   # lane-dense / N-tileable MLM head

    keys = iter(jax.random.split(key, 8 + 8 * n_layers))

    def nrm(shape, std=0.02, dtype=jnp.float32):
        return (jax.random.normal(next(keys), shape, jnp.float32) * std).astype(dtype)

    params = {
        "tok_emb": nrm((vocab_size, d_model)),
        "seg_emb": nrm((3, d_model)),
        # NSP head stays f32 and runs in plain XLA (2-wide output).
        "nsp_w": nrm((d_model, 2)), "nsp_b": nrm((2,)),
        # MLM head weight padded to a 128-multiple of the vocab; padded logits sliced off.
        "mlm_w": nrm((d_model, vocab_pad), dtype=jnp.bfloat16),
        "mlm_b": nrm((vocab_pad,)),
    }
    # sinusoidal positional-encoding table, exactly as in PositionalEncoding.__init__
    pos = jnp.arange(max_len, dtype=jnp.float32)[:, None]
    div = jnp.exp(-jnp.arange(0, d_model, 2, dtype=jnp.float32)
                  * math.log(10000.0) / d_model)
    pe = jnp.zeros((max_len, d_model), jnp.float32)
    pe = pe.at[:, 0::2].set(jnp.sin(pos * div))
    pe = pe.at[:, 1::2].set(jnp.cos(pos * div))
    params["pos_enc"] = pe

    layers = []
    for _ in range(n_layers):
        # Fold the 1/sqrt(hd) attention scale into the Q columns of in_proj at init:
        # (x @ (Wq*s)) @ K^T == s * ((x @ Wq) @ K^T), so no per-score multiply in-kernel.
        in_w = jax.random.normal(next(keys), (d_model, 3 * d_model), jnp.float32) * 0.02
        in_w = in_w.at[:, :d_model].multiply(attn_scale)
        in_b = jax.random.normal(next(keys), (3 * d_model,), jnp.float32) * 0.02
        in_b = in_b.at[:d_model].multiply(attn_scale)
        layers.append({
            "in_proj_w": in_w.astype(jnp.bfloat16),
            "in_proj_b": in_b,
            "out_proj_w": nrm((d_model, d_model), dtype=jnp.bfloat16),
            "out_proj_b": nrm((d_model,)),
            "ln1_g": jnp.ones((d_model,), jnp.float32),
            "ln1_b": jnp.zeros((d_model,), jnp.float32),
            "ffn1_w": nrm((d_model, dim_ff), dtype=jnp.bfloat16),
            "ffn1_b": nrm((dim_ff,)),
            "ffn2_w": nrm((dim_ff, d_model), dtype=jnp.bfloat16),
            "ffn2_b": nrm((d_model,)),
            "ln2_g": jnp.ones((d_model,), jnp.float32),
            "ln2_b": jnp.zeros((d_model,), jnp.float32),
        })
    params["layers"] = layers
    return params


# ---------------------------- forward ----------------------------

def bert_forward(params, tokens, segments, *, heads, vocab_size):
    # tokens, segments: (S, B) int32  (seq-major, batch_first=False like the PyTorch module)
    S, B = tokens.shape
    D = params["tok_emb"].shape[1]
    H = heads
    hd = D // H

    # ---- BERTEmbedding (train=True path; dropouts are identity) ----
    tok = params["tok_emb"][tokens] * jnp.float32(math.sqrt(D))         # (S, B, D)
    seg = params["seg_emb"][segments]                                   # (S, B, D)
    pe = params["pos_enc"][:B][None, :, :]     # PyTorch quirk: table sliced by x.size(1)==B
    x = tok + (tok + pe) + seg                                          # (S, B, D)

    # key padding mask -> additive bias (B, 1, S); pad_idx == 0; bf16-safe magnitude
    pad = (tokens == 0).T                                               # (B, S)
    mask_bias = jnp.where(pad, -1e9, 0.0).astype(jnp.float32)[:, None, :]

    # batch-major bf16 activation stream
    xf = x.transpose(1, 0, 2).reshape(B * S, D).astype(jnp.bfloat16)    # (B*S, D)

    for lp in params["layers"]:
        # --- self-attention block (post-LN) ---
        qkv = linear(xf, lp["in_proj_w"], lp["in_proj_b"])              # (B*S, 3D) bf16
        qkv5 = qkv.reshape(B, S, 3, H, hd)
        q = qkv5[:, :, 0].transpose(0, 2, 1, 3)                         # (B, H, S, hd)
        k = qkv5[:, :, 1].transpose(0, 2, 1, 3)
        v = qkv5[:, :, 2].transpose(0, 2, 1, 3)
        attn = multihead_attention(q, k, v, mask_bias)                  # (B, H, S, hd)
        attn = attn.transpose(0, 2, 1, 3).reshape(B * S, D)             # (B*S, D)
        xf = linear_add_layernorm(attn, lp["out_proj_w"], lp["out_proj_b"],
                                  xf, lp["ln1_g"], lp["ln1_b"])         # (B*S, D)
        # --- feed-forward block ---
        ff = linear(xf, lp["ffn1_w"], lp["ffn1_b"], relu=True)          # (B*S, FF)
        xf = linear_add_layernorm(ff, lp["ffn2_w"], lp["ffn2_b"],
                                  xf, lp["ln2_g"], lp["ln2_b"])         # (B*S, D)

    enc = xf.reshape(B, S, D)

    # NSP head on sequence position 0 -> plain XLA (2-lane pallas output is pure overhead)
    cls = enc[:, 0, :].astype(jnp.float32)                              # (B, D)
    next_sentence = cls @ params["nsp_w"] + params["nsp_b"]             # (B, 2) f32

    # MLM head: seq-major input so the (S, B, V) logits need no output transpose;
    # logits emitted in bf16 (upcast in the loss); padded vocab columns sliced off.
    enc_sb = enc.transpose(1, 0, 2).reshape(S * B, D)                   # (S*B, D) bf16
    mlm = linear(enc_sb, params["mlm_w"], params["mlm_b"])              # (S*B, Vpad) bf16
    vocab_pad = params["mlm_w"].shape[1]
    masked_lm = mlm.reshape(S, B, vocab_pad)[:, :, :vocab_size]         # (S, B, V)
    return next_sentence, masked_lm


# ---------------------------- main ----------------------------

if __name__ == "__main__":
    VOCAB, D_MODEL, N_LAYERS, HEADS = 64, 32, 2, 4
    S, B = 8, 2

    key = jax.random.PRNGKey(0)
    kp, kt, ks = jax.random.split(key, 3)
    params = init_params(kp, VOCAB, D_MODEL, N_LAYERS, HEADS)

    tokens = jax.random.randint(kt, (S, B), 1, VOCAB, dtype=jnp.int32)
    tokens = tokens.at[-1, 0].set(0)       # one pad token exercises the key-padding mask
    segments = jax.random.randint(ks, (S, B), 0, 3, dtype=jnp.int32)

    fwd = jax.jit(functools.partial(bert_forward, heads=HEADS, vocab_size=VOCAB))
    nsp, mlm = fwd(params, tokens, segments)
    jax.block_until_ready((nsp, mlm))

    assert nsp.shape == (B, 2), nsp.shape
    assert mlm.shape == (S, B, VOCAB), mlm.shape
    assert bool(jnp.isfinite(nsp).all())
    assert bool(jnp.isfinite(mlm.astype(jnp.float32)).all())
    print("KERNEL_OK")
</pallas_src>

<mosaic_0001>
module attributes {stable_mosaic.version = 11 : i64} {
  func.func @_flash_attn_kernel(%arg0: i32, %arg1: i32, %arg2: i32, %arg3: memref<1x1x8x8xbf16, #tpu.memory_space<vmem>>, %arg4: memref<1x1x8x8xbf16, #tpu.memory_space<vmem>>, %arg5: memref<1x1x8x8xbf16, #tpu.memory_space<vmem>>, %arg6: memref<1x1x8xf32, #tpu.memory_space<vmem>>, %arg7: memref<1x1x8x8xbf16, #tpu.memory_space<vmem>>, %arg8: memref<8x1xf32, #tpu.memory_space<vmem>>, %arg9: memref<8x1xf32, #tpu.memory_space<vmem>>, %arg10: memref<8x8xf32, #tpu.memory_space<vmem>>) attributes {dimension_semantics = [#tpu.dimension_semantics<parallel>, #tpu.dimension_semantics<parallel>, #tpu.dimension_semantics<arbitrary>], iteration_bounds = array<i64: 2, 4, 1>, scalar_prefetch = 0 : i64, scratch_operands = 3 : i64, tpu.core_type = #tpu.core_type<tc>, window_params = [{transform_indices = @transform_0, window_bounds = array<i64: 1, 1, 8, 8>}, {transform_indices = @transform_1, window_bounds = array<i64: 1, 1, 8, 8>}, {transform_indices = @transform_2, window_bounds = array<i64: 1, 1, 8, 8>}, {transform_indices = @transform_3, window_bounds = array<i64: 1, 1, 8>}, {transform_indices = @transform_4, window_bounds = array<i64: 1, 1, 8, 8>}]} {
    %c0_i32 = arith.constant 0 : i32
    %0 = arith.cmpi eq, %arg2, %c0_i32 : i32
    %1 = arith.extui %0 : i1 to i32
    %c0_i32_0 = arith.constant 0 : i32
    %2 = arith.cmpi ne, %1, %c0_i32_0 : i32
    scf.if %2 {
      %cst_32 = arith.constant 0xFF800000 : f32
      %40 = vector.broadcast %cst_32 : f32 to vector<8x1xf32>
      %c0_33 = arith.constant 0 : index
      %c0_34 = arith.constant 0 : index
      %41 = vector.load %arg8[%c0_33, %c0_34] : memref<8x1xf32, #tpu.memory_space<vmem>>, vector<8x1xf32>
      tpu.vector_store %arg8[%c0_33, %c0_34], %40 {strides = array<i32>} : memref<8x1xf32, #tpu.memory_space<vmem>>, vector<8x1xf32>,
      %cst_35 = arith.constant 0.000000e+00 : f32
      %42 = vector.broadcast %cst_35 : f32 to vector<8x1xf32>
      %c0_36 = arith.constant 0 : index
      %c0_37 = arith.constant 0 : index
      %43 = vector.load %arg9[%c0_36, %c0_37] : memref<8x1xf32, #tpu.memory_space<vmem>>, vector<8x1xf32>
      tpu.vector_store %arg9[%c0_36, %c0_37], %42 {strides = array<i32>} : memref<8x1xf32, #tpu.memory_space<vmem>>, vector<8x1xf32>,
      %cst_38 = arith.constant 0.000000e+00 : f32
      %44 = vector.broadcast %cst_38 : f32 to vector<8x8xf32>
      %c0_39 = arith.constant 0 : index
      %c0_40 = arith.constant 0 : index
      %45 = vector.load %arg10[%c0_39, %c0_40] : memref<8x8xf32, #tpu.memory_space<vmem>>, vector<8x8xf32>
      tpu.vector_store %arg10[%c0_39, %c0_40], %44 {strides = array<i32>} : memref<8x8xf32, #tpu.memory_space<vmem>>, vector<8x8xf32>,
    } else {
    }
    %c0 = arith.constant 0 : index
    %c0_1 = arith.constant 0 : index
    %c0_2 = arith.constant 0 : index
    %c0_3 = arith.constant 0 : index
    %3 = vector.load %arg3[%c0, %c0_1, %c0_2, %c0_3] : memref<1x1x8x8xbf16, #tpu.memory_space<vmem>>, vector<1x1x8x8xbf16>
    %4 = vector.shape_cast %3 : vector<1x1x8x8xbf16> to vector<8x8xbf16>
    %c0_4 = arith.constant 0 : index
    %c0_5 = arith.constant 0 : index
    %c0_6 = arith.constant 0 : index
    %c0_7 = arith.constant 0 : index
    %5 = vector.load %arg4[%c0_4, %c0_5, %c0_6, %c0_7] : memref<1x1x8x8xbf16, #tpu.memory_space<vmem>>, vector<1x1x8x8xbf16>
    %6 = vector.shape_cast %5 : vector<1x1x8x8xbf16> to vector<8x8xbf16>
    %c0_8 = arith.constant 0 : index
    %c0_9 = arith.constant 0 : index
    %c0_10 = arith.constant 0 : index
    %c0_11 = arith.constant 0 : index
    %7 = vector.load %arg5[%c0_8, %c0_9, %c0_10, %c0_11] : memref<1x1x8x8xbf16, #tpu.memory_space<vmem>>, vector<1x1x8x8xbf16>
    %8 = vector.shape_cast %7 : vector<1x1x8x8xbf16> to vector<8x8xbf16>
    %cst = arith.constant dense<0.000000e+00> : vector<8x8xf32>
    %9 = tpu.matmul %4, %6, %cst {dimension_numbers = #tpu.dot_dimension_numbers<[1], [1], [0], [0], [0, 0, 1, 0], [], []>} : vector<8x8xbf16>, vector<8x8xbf16>, vector<8x8xf32> -> vector<8x8xf32>
    %c0_12 = arith.constant 0 : index
    %c0_13 = arith.constant 0 : index
    %c0_14 = arith.constant 0 : index
    %10 = vector.load %arg6[%c0_12, %c0_13, %c0_14] : memref<1x1x8xf32, #tpu.memory_space<vmem>>, vector<1x1x8xf32>
    %11 = vector.shape_cast %10 : vector<1x1x8xf32> to vector<1x8xf32>
    %12 = vector.broadcast %11 : vector<1x8xf32> to vector<8x8xf32>
    %13 = arith.addf %9, %12 : vector<8x8xf32>
    %c0_15 = arith.constant 0 : index
    %c0_16 = arith.constant 0 : index
    %14 = vector.load %arg8[%c0_15, %c0_16] : memref<8x1xf32, #tpu.memory_space<vmem>>, vector<8x1xf32>
    %cst_17 = arith.constant dense<0xFF800000> : vector<8xf32>
    %15 = vector.multi_reduction <maximumf>, %13, %cst_17 [1] : vector<8x8xf32> to vector<8xf32>
    %16 = vector.shape_cast %15 : vector<8xf32> to vector<8x1xf32>
    %17 = arith.maximumf %14, %16 : vector<8x1xf32>
    %18 = arith.subf %14, %17 : vector<8x1xf32>
    %19 = math.exp %18 : vector<8x1xf32>
    %20 = vector.broadcast %17 : vector<8x1xf32> to vector<8x8xf32>
    %21 = arith.subf %13, %20 : vector<8x8xf32>
    %22 = math.exp %21 : vector<8x8xf32>
    %c0_18 = arith.constant 0 : index
    %c0_19 = arith.constant 0 : index
    %23 = vector.load %arg9[%c0_18, %c0_19] : memref<8x1xf32, #tpu.memory_space<vmem>>, vector<8x1xf32>
    %24 = arith.mulf %19, %23 : vector<8x1xf32>
    %cst_20 = arith.constant dense<0.000000e+00> : vector<8xf32>
    %25 = vector.multi_reduction <add>, %22, %cst_20 [1] : vector<8x8xf32> to vector<8xf32>
    %26 = vector.shape_cast %25 : vector<8xf32> to vector<8x1xf32>
    %27 = arith.addf %24, %26 : vector<8x1xf32>
    %c0_21 = arith.constant 0 : index
    %c0_22 = arith.constant 0 : index
    %28 = vector.load %arg9[%c0_21, %c0_22] : memref<8x1xf32, #tpu.memory_space<vmem>>, vector<8x1xf32>
    tpu.vector_store %arg9[%c0_21, %c0_22], %27 {strides = array<i32>} : memref<8x1xf32, #tpu.memory_space<vmem>>, vector<8x1xf32>,
    %c0_23 = arith.constant 0 : index
    %c0_24 = arith.constant 0 : index
    %29 = vector.load %arg10[%c0_23, %c0_24] : memref<8x8xf32, #tpu.memory_space<vmem>>, vector<8x8xf32>
    %30 = vector.broadcast %19 : vector<8x1xf32> to vector<8x8xf32>
    %31 = arith.mulf %30, %29 : vector<8x8xf32>
    %32 = arith.truncf %22 : vector<8x8xf32> to vector<8x8xbf16>
    %cst_25 = arith.constant dense<0.000000e+00> : vector<8x8xf32>
    %33 = tpu.matmul %32, %8, %cst_25 {dimension_numbers = #tpu.dot_dimension_numbers<[1], [0], [0], [1], [0, 0, 1, 1], [], []>} : vector<8x8xbf16>, vector<8x8xbf16>, vector<8x8xf32> -> vector<8x8xf32>
    %34 = arith.addf %31, %33 : vector<8x8xf32>
    %c0_26 = arith.constant 0 : index
    %c0_27 = arith.constant 0 : index
    %35 = vector.load %arg10[%c0_26, %c0_27] : memref<8x8xf32, #tpu.memory_space<vmem>>, vector<8x8xf32>
    tpu.vector_store %arg10[%c0_26, %c0_27], %34 {strides = array<i32>} : memref<8x8xf32, #tpu.memory_space<vmem>>, vector<8x8xf32>,
    %c0_28 = arith.constant 0 : index
    %c0_29 = arith.constant 0 : index
    %36 = vector.load %arg8[%c0_28, %c0_29] : memref<8x1xf32, #tpu.memory_space<vmem>>, vector<8x1xf32>
    tpu.vector_store %arg8[%c0_28, %c0_29], %17 {strides = array<i32>} : memref<8x1xf32, #tpu.memory_space<vmem>>, vector<8x1xf32>,
    %c0_i32_30 = arith.constant 0 : i32
    %37 = arith.cmpi eq, %arg2, %c0_i32_30 : i32
    %38 = arith.extui %37 : i1 to i32
    %c0_i32_31 = arith.constant 0 : i32
    %39 = arith.cmpi ne, %38, %c0_i32_31 : i32
    scf.if %39 {
      %c0_32 = arith.constant 0 : index
      %c0_33 = arith.constant 0 : index
      %40 = vector.load %arg10[%c0_32, %c0_33] : memref<8x8xf32, #tpu.memory_space<vmem>>, vector<8x8xf32>
      %c0_34 = arith.constant 0 : index
      %c0_35 = arith.constant 0 : index
      %41 = vector.load %arg9[%c0_34, %c0_35] : memref<8x1xf32, #tpu.memory_space<vmem>>, vector<8x1xf32>
      %42 = tpu.reciprocal %41 {approx = true} : vector<8x1xf32> -> vector<8x1xf32>
      %43 = vector.broadcast %42 : vector<8x1xf32> to vector<8x8xf32>
      %44 = arith.mulf %40, %43 : vector<8x8xf32>
      %45 = arith.truncf %44 : vector<8x8xf32> to vector<8x8xbf16>
      %c0_36 = arith.constant 0 : index
      %c0_37 = arith.constant 0 : index
      %c0_38 = arith.constant 0 : index
      %c0_39 = arith.constant 0 : index
      %46 = vector.load %arg7[%c0_36, %c0_37, %c0_38, %c0_39] : memref<1x1x8x8xbf16, #tpu.memory_space<vmem>>, vector<1x1x8x8xbf16>
      %47 = vector.shape_cast %46 : vector<1x1x8x8xbf16> to vector<8x8xbf16>
      %48 = vector.shape_cast %45 : vector<8x8xbf16> to vector<1x1x8x8xbf16>
      tpu.vector_store %arg7[%c0_36, %c0_37, %c0_38, %c0_39], %48 {strides = array<i32>} : memref<1x1x8x8xbf16, #tpu.memory_space<vmem>>, vector<1x1x8x8xbf16>,
    } else {
    }
    return
  }
  func.func @transform_0(%arg0: i32, %arg1: i32, %arg2: i32) -> (i32, i32, i32, i32) {
    %c0_i32 = arith.constant 0 : i32
    %c0_i32_0 = arith.constant 0 : i32
    %c0_i32_1 = arith.constant 0 : i32
    return %arg0, %arg1, %c0_i32, %c0_i32_0 : i32, i32, i32, i32
  }
  func.func @transform_1(%arg0: i32, %arg1: i32, %arg2: i32) -> (i32, i32, i32, i32) {
    %c0_i32 = arith.constant 0 : i32
    %c0_i32_0 = arith.constant 0 : i32
    return %arg0, %arg1, %arg2, %c0_i32 : i32, i32, i32, i32
  }
  func.func @transform_2(%arg0: i32, %arg1: i32, %arg2: i32) -> (i32, i32, i32, i32) {
    %c0_i32 = arith.constant 0 : i32
    %c0_i32_0 = arith.constant 0 : i32
    return %arg0, %arg1, %arg2, %c0_i32 : i32, i32, i32, i32
  }
  func.func @transform_3(%arg0: i32, %arg1: i32, %arg2: i32) -> (i32, i32, i32) {
    %c0_i32 = arith.constant 0 : i32
    %c0_i32_0 = arith.constant 0 : i32
    return %arg0, %c0_i32, %arg2 : i32, i32, i32
  }
  func.func @transform_4(%arg0: i32, %arg1: i32, %arg2: i32) -> (i32, i32, i32, i32) {
    %c0_i32 = arith.constant 0 : i32
    %c0_i32_0 = arith.constant 0 : i32
    %c0_i32_1 = arith.constant 0 : i32
    return %arg0, %arg1, %c0_i32, %c0_i32_0 : i32, i32, i32, i32
  }
}

module attributes {stable_mosaic.version = 11 : i64} {
  func.func @_linear_kernel(%arg0: i32, %arg1: i32, %arg2: memref<16x32xbf16, #tpu.memory_space<vmem>>, %arg3: memref<32x96xbf16, #tpu.memory_space<vmem>>, %arg4: memref<1x96xf32, #tpu.memory_space<vmem>>, %arg5: memref<16x96xbf16, #tpu.memory_space<vmem>>) attributes {dimension_semantics = [#tpu.dimension_semantics<parallel>, #tpu.dimension_semantics<parallel>], iteration_bounds = array<i64: 1, 1>, scalar_prefetch = 0 : i64, scratch_operands = 0 : i64, tpu.core_type = #tpu.core_type<tc>, window_params = [{transform_indices = @transform_0, window_bounds = array<i64: 16, 32>}, {transform_indices = @transform_1, window_bounds = array<i64: 32, 96>}, {transform_indices = @transform_2, window_bounds = array<i64: 1, 96>}, {transform_indices = @transform_3, window_bounds = array<i64: 16, 96>}]} {
    %c0 = arith.constant 0 : index
    %c0_0 = arith.constant 0 : index
    %0 = vector.load %arg2[%c0, %c0_0] : memref<16x32xbf16, #tpu.memory_space<vmem>>, vector<16x32xbf16>
    %c0_1 = arith.constant 0 : index
    %c0_2 = arith.constant 0 : index
    %1 = vector.load %arg3[%c0_1, %c0_2] : memref<32x96xbf16, #tpu.memory_space<vmem>>, vector<32x96xbf16>
    %cst = arith.constant dense<0.000000e+00> : vector<16x96xf32>
    %2 = tpu.matmul %0, %1, %cst {dimension_numbers = #tpu.dot_dimension_numbers<[1], [0], [0], [1], [0, 0, 1, 1], [], []>} : vector<16x32xbf16>, vector<32x96xbf16>, vector<16x96xf32> -> vector<16x96xf32>
    %c0_3 = arith.constant 0 : index
    %c0_4 = arith.constant 0 : index
    %3 = vector.load %arg4[%c0_3, %c0_4] : memref<1x96xf32, #tpu.memory_space<vmem>>, vector<1x96xf32>
    %4 = vector.broadcast %3 : vector<1x96xf32> to vector<16x96xf32>
    %5 = arith.addf %2, %4 : vector<16x96xf32>
    %6 = arith.truncf %5 : vector<16x96xf32> to vector<16x96xbf16>
    %c0_5 = arith.constant 0 : index
    %c0_6 = arith.constant 0 : index
    %7 = vector.load %arg5[%c0_5, %c0_6] : memref<16x96xbf16, #tpu.memory_space<vmem>>, vector<16x96xbf16>
    tpu.vector_store %arg5[%c0_5, %c0_6], %6 {strides = array<i32>} : memref<16x96xbf16, #tpu.memory_space<vmem>>, vector<16x96xbf16>,
    return
  }
  func.func @transform_0(%arg0: i32, %arg1: i32) -> (i32, i32) {
    %c0_i32 = arith.constant 0 : i32
    %c0_i32_0 = arith.constant 0 : i32
    return %arg1, %c0_i32 : i32, i32
  }
  func.func @transform_1(%arg0: i32, %arg1: i32) -> (i32, i32) {
    %c0_i32 = arith.constant 0 : i32
    %c0_i32_0 = arith.constant 0 : i32
    return %c0_i32, %arg0 : i32, i32
  }
  func.func @transform_2(%arg0: i32, %arg1: i32) -> (i32, i32) {
    %c0_i32 = arith.constant 0 : i32
    %c0_i32_0 = arith.constant 0 : i32
    return %c0_i32, %arg0 : i32, i32
  }
  func.func @transform_3(%arg0: i32, %arg1: i32) -> (i32, i32) {
    %c0_i32 = arith.constant 0 : i32
    return %arg1, %arg0 : i32, i32
  }
}

module attributes {stable_mosaic.version = 11 : i64} {
  func.func @_linear_add_ln_kernel(%arg0: i32, %arg1: memref<16x32xbf16, #tpu.memory_space<vmem>>, %arg2: memref<32x32xbf16, #tpu.memory_space<vmem>>, %arg3: memref<1x32xf32, #tpu.memory_space<vmem>>, %arg4: memref<16x32xbf16, #tpu.memory_space<vmem>>, %arg5: memref<1x32xf32, #tpu.memory_space<vmem>>, %arg6: memref<1x32xf32, #tpu.memory_space<vmem>>, %arg7: memref<16x32xbf16, #tpu.memory_space<vmem>>) attributes {dimension_semantics = [#tpu.dimension_semantics<parallel>], iteration_bounds = array<i64: 1>, scalar_prefetch = 0 : i64, scratch_operands = 0 : i64, tpu.core_type = #tpu.core_type<tc>, window_params = [{transform_indices = @transform_0, window_bounds = array<i64: 16, 32>}, {pipeline_mode = #tpu.pipeline_mode<synchronous>, transform_indices = @transform_1, window_bounds = array<i64: 32, 32>}, {pipeline_mode = #tpu.pipeline_mode<synchronous>, transform_indices = @transform_2, window_bounds = array<i64: 1, 32>}, {transform_indices = @transform_3, window_bounds = array<i64: 16, 32>}, {pipeline_mode = #tpu.pipeline_mode<synchronous>, transform_indices = @transform_4, window_bounds = array<i64: 1, 32>}, {pipeline_mode = #tpu.pipeline_mode<synchronous>, transform_indices = @transform_5, window_bounds = array<i64: 1, 32>}, {transform_indices = @transform_6, window_bounds = array<i64: 16, 32>}]} {
    %c0 = arith.constant 0 : index
    %c0_0 = arith.constant 0 : index
    %0 = vector.load %arg1[%c0, %c0_0] : memref<16x32xbf16, #tpu.memory_space<vmem>>, vector<16x32xbf16>
    %c0_1 = arith.constant 0 : index
    %c0_2 = arith.constant 0 : index
    %1 = vector.load %arg2[%c0_1, %c0_2] : memref<32x32xbf16, #tpu.memory_space<vmem>>, vector<32x32xbf16>
    %cst = arith.constant dense<0.000000e+00> : vector<16x32xf32>
    %2 = tpu.matmul %0, %1, %cst {dimension_numbers = #tpu.dot_dimension_numbers<[1], [0], [0], [1], [0, 0, 1, 1], [], []>} : vector<16x32xbf16>, vector<32x32xbf16>, vector<16x32xf32> -> vector<16x32xf32>
    %c0_3 = arith.constant 0 : index
    %c0_4 = arith.constant 0 : index
    %3 = vector.load %arg3[%c0_3, %c0_4] : memref<1x32xf32, #tpu.memory_space<vmem>>, vector<1x32xf32>
    %4 = vector.broadcast %3 : vector<1x32xf32> to vector<16x32xf32>
    %5 = arith.addf %2, %4 : vector<16x32xf32>
    %c0_5 = arith.constant 0 : index
    %c0_6 = arith.constant 0 : index
    %6 = vector.load %arg4[%c0_5, %c0_6] : memref<16x32xbf16, #tpu.memory_space<vmem>>, vector<16x32xbf16>
    %7 = arith.extf %6 : vector<16x32xbf16> to vector<16x32xf32>
    %8 = arith.addf %5, %7 : vector<16x32xf32>
    %cst_7 = arith.constant dense<0.000000e+00> : vector<16xf32>
    %9 = vector.multi_reduction <add>, %8, %cst_7 [1] : vector<16x32xf32> to vector<16xf32>
    %10 = vector.shape_cast %9 : vector<16xf32> to vector<16x1xf32>
    %cst_8 = arith.constant 3.200000e+01 : f32
    %11 = vector.broadcast %cst_8 : f32 to vector<16x1xf32>
    %12 = arith.divf %10, %11 : vector<16x1xf32>
    %13 = vector.broadcast %12 : vector<16x1xf32> to vector<16x32xf32>
    %14 = arith.subf %8, %13 : vector<16x32xf32>
    %15 = arith.mulf %14, %14 : vector<16x32xf32>
    %cst_9 = arith.constant dense<0.000000e+00> : vector<16xf32>
    %16 = vector.multi_reduction <add>, %15, %cst_9 [1] : vector<16x32xf32> to vector<16xf32>
    %17 = vector.shape_cast %16 : vector<16xf32> to vector<16x1xf32>
    %cst_10 = arith.constant 3.200000e+01 : f32
    %18 = vector.broadcast %cst_10 : f32 to vector<16x1xf32>
    %19 = arith.divf %17, %18 : vector<16x1xf32>
    %20 = vector.broadcast %12 : vector<16x1xf32> to vector<16x32xf32>
    %21 = arith.subf %8, %20 : vector<16x32xf32>
    %cst_11 = arith.constant 9.99999974E-6 : f32
    %22 = vector.broadcast %cst_11 : f32 to vector<16x1xf32>
    %23 = arith.addf %19, %22 : vector<16x1xf32>
    %24 = math.rsqrt %23 : vector<16x1xf32>
    %25 = vector.broadcast %24 : vector<16x1xf32> to vector<16x32xf32>
    %26 = arith.mulf %21, %25 : vector<16x32xf32>
    %c0_12 = arith.constant 0 : index
    %c0_13 = arith.constant 0 : index
    %27 = vector.load %arg5[%c0_12, %c0_13] : memref<1x32xf32, #tpu.memory_space<vmem>>, vector<1x32xf32>
    %28 = vector.broadcast %27 : vector<1x32xf32> to vector<16x32xf32>
    %29 = arith.mulf %26, %28 : vector<16x32xf32>
    %c0_14 = arith.constant 0 : index
    %c0_15 = arith.constant 0 : index
    %30 = vector.load %arg6[%c0_14, %c0_15] : memref<1x32xf32, #tpu.memory_space<vmem>>, vector<1x32xf32>
    %31 = vector.broadcast %30 : vector<1x32xf32> to vector<16x32xf32>
    %32 = arith.addf %29, %31 : vector<16x32xf32>
    %33 = arith.truncf %32 : vector<16x32xf32> to vector<16x32xbf16>
    %c0_16 = arith.constant 0 : index
    %c0_17 = arith.constant 0 : index
    %34 = vector.load %arg7[%c0_16, %c0_17] : memref<16x32xbf16, #tpu.memory_space<vmem>>, vector<16x32xbf16>
    tpu.vector_store %arg7[%c0_16, %c0_17], %33 {strides = array<i32>} : memref<16x32xbf16, #tpu.memory_space<vmem>>, vector<16x32xbf16>,
    return
  }
  func.func @transform_0(%arg0: i32) -> (i32, i32) {
    %c0_i32 = arith.constant 0 : i32
    %c0_i32_0 = arith.constant 0 : i32
    return %arg0, %c0_i32 : i32, i32
  }
  func.func @transform_1(%arg0: i32) -> (i32, i32) {
    %c0_i32 = arith.constant 0 : i32
    %c0_i32_0 = arith.constant 0 : i32
    %c0_i32_1 = arith.constant 0 : i32
    return %c0_i32, %c0_i32_0 : i32, i32
  }
  func.func @transform_2(%arg0: i32) -> (i32, i32) {
    %c0_i32 = arith.constant 0 : i32
    %c0_i32_0 = arith.constant 0 : i32
    %c0_i32_1 = arith.constant 0 : i32
    return %c0_i32, %c0_i32_0 : i32, i32
  }
  func.func @transform_3(%arg0: i32) -> (i32, i32) {
    %c0_i32 = arith.constant 0 : i32
    %c0_i32_0 = arith.constant 0 : i32
    return %arg0, %c0_i32 : i32, i32
  }
  func.func @transform_4(%arg0: i32) -> (i32, i32) {
    %c0_i32 = arith.constant 0 : i32
    %c0_i32_0 = arith.constant 0 : i32
    %c0_i32_1 = arith.constant 0 : i32
    return %c0_i32, %c0_i32_0 : i32, i32
  }
  func.func @transform_5(%arg0: i32) -> (i32, i32) {
    %c0_i32 = arith.constant 0 : i32
    %c0_i32_0 = arith.constant 0 : i32
    %c0_i32_1 = arith.constant 0 : i32
    return %c0_i32, %c0_i32_0 : i32, i32
  }
  func.func @transform_6(%arg0: i32) -> (i32, i32) {
    %c0_i32 = arith.constant 0 : i32
    %c0_i32_0 = arith.constant 0 : i32
    return %arg0, %c0_i32 : i32, i32
  }
}

module attributes {stable_mosaic.version = 11 : i64} {
  func.func @_linear_kernel(%arg0: i32, %arg1: i32, %arg2: memref<16x32xbf16, #tpu.memory_space<vmem>>, %arg3: memref<32x512xbf16, #tpu.memory_space<vmem>>, %arg4: memref<1x512xf32, #tpu.memory_space<vmem>>, %arg5: memref<16x512xbf16, #tpu.memory_space<vmem>>) attributes {dimension_semantics = [#tpu.dimension_semantics<parallel>, #tpu.dimension_semantics<parallel>], iteration_bounds = array<i64: 4, 1>, scalar_prefetch = 0 : i64, scratch_operands = 0 : i64, tpu.core_type = #tpu.core_type<tc>, window_params = [{transform_indices = @transform_0, window_bounds = array<i64: 16, 32>}, {transform_indices = @transform_1, window_bounds = array<i64: 32, 512>}, {transform_indices = @transform_2, window_bounds = array<i64: 1, 512>}, {transform_indices = @transform_3, window_bounds = array<i64: 16, 512>}]} {
    %c0 = arith.constant 0 : index
    %c0_0 = arith.constant 0 : index
    %0 = vector.load %arg2[%c0, %c0_0] : memref<16x32xbf16, #tpu.memory_space<vmem>>, vector<16x32xbf16>
    %c0_1 = arith.constant 0 : index
    %c0_2 = arith.constant 0 : index
    %1 = vector.load %arg3[%c0_1, %c0_2] : memref<32x512xbf16, #tpu.memory_space<vmem>>, vector<32x512xbf16>
    %cst = arith.constant dense<0.000000e+00> : vector<16x512xf32>
    %2 = tpu.matmul %0, %1, %cst {dimension_numbers = #tpu.dot_dimension_numbers<[1], [0], [0], [1], [0, 0, 1, 1], [], []>} : vector<16x32xbf16>, vector<32x512xbf16>, vector<16x512xf32> -> vector<16x512xf32>
    %c0_3 = arith.constant 0 : index
    %c0_4 = arith.constant 0 : index
    %3 = vector.load %arg4[%c0_3, %c0_4] : memref<1x512xf32, #tpu.memory_space<vmem>>, vector<1x512xf32>
    %4 = vector.broadcast %3 : vector<1x512xf32> to vector<16x512xf32>
    %5 = arith.addf %2, %4 : vector<16x512xf32>
    %cst_5 = arith.constant 0.000000e+00 : f32
    %6 = vector.broadcast %cst_5 : f32 to vector<16x512xf32>
    %7 = arith.maximumf %5, %6 : vector<16x512xf32>
    %8 = arith.truncf %7 : vector<16x512xf32> to vector<16x512xbf16>
    %c0_6 = arith.constant 0 : index
    %c0_7 = arith.constant 0 : index
    %9 = vector.load %arg5[%c0_6, %c0_7] : memref<16x512xbf16, #tpu.memory_space<vmem>>, vector<16x512xbf16>
    tpu.vector_store %arg5[%c0_6, %c0_7], %8 {strides = array<i32>} : memref<16x512xbf16, #tpu.memory_space<vmem>>, vector<16x512xbf16>,
    return
  }
  func.func @transform_0(%arg0: i32, %arg1: i32) -> (i32, i32) {
    %c0_i32 = arith.constant 0 : i32
    %c0_i32_0 = arith.constant 0 : i32
    return %arg1, %c0_i32 : i32, i32
  }
  func.func @transform_1(%arg0: i32, %arg1: i32) -> (i32, i32) {
    %c0_i32 = arith.constant 0 : i32
    %c0_i32_0 = arith.constant 0 : i32
    return %c0_i32, %arg0 : i32, i32
  }
  func.func @transform_2(%arg0: i32, %arg1: i32) -> (i32, i32) {
    %c0_i32 = arith.constant 0 : i32
    %c0_i32_0 = arith.constant 0 : i32
    return %c0_i32, %arg0 : i32, i32
  }
  func.func @transform_3(%arg0: i32, %arg1: i32) -> (i32, i32) {
    %c0_i32 = arith.constant 0 : i32
    return %arg1, %arg0 : i32, i32
  }
}

module attributes {stable_mosaic.version = 11 : i64} {
  func.func @_linear_add_ln_kernel(%arg0: i32, %arg1: memref<16x2048xbf16, #tpu.memory_space<vmem>>, %arg2: memref<2048x32xbf16, #tpu.memory_space<vmem>>, %arg3: memref<1x32xf32, #tpu.memory_space<vmem>>, %arg4: memref<16x32xbf16, #tpu.memory_space<vmem>>, %arg5: memref<1x32xf32, #tpu.memory_space<vmem>>, %arg6: memref<1x32xf32, #tpu.memory_space<vmem>>, %arg7: memref<16x32xbf16, #tpu.memory_space<vmem>>) attributes {dimension_semantics = [#tpu.dimension_semantics<parallel>], iteration_bounds = array<i64: 1>, scalar_prefetch = 0 : i64, scratch_operands = 0 : i64, tpu.core_type = #tpu.core_type<tc>, window_params = [{transform_indices = @transform_0, window_bounds = array<i64: 16, 2048>}, {pipeline_mode = #tpu.pipeline_mode<synchronous>, transform_indices = @transform_1, window_bounds = array<i64: 2048, 32>}, {pipeline_mode = #tpu.pipeline_mode<synchronous>, transform_indices = @transform_2, window_bounds = array<i64: 1, 32>}, {transform_indices = @transform_3, window_bounds = array<i64: 16, 32>}, {pipeline_mode = #tpu.pipeline_mode<synchronous>, transform_indices = @transform_4, window_bounds = array<i64: 1, 32>}, {pipeline_mode = #tpu.pipeline_mode<synchronous>, transform_indices = @transform_5, window_bounds = array<i64: 1, 32>}, {transform_indices = @transform_6, window_bounds = array<i64: 16, 32>}]} {
    %c0 = arith.constant 0 : index
    %c0_0 = arith.constant 0 : index
    %0 = vector.load %arg1[%c0, %c0_0] : memref<16x2048xbf16, #tpu.memory_space<vmem>>, vector<16x2048xbf16>
    %c0_1 = arith.constant 0 : index
    %c0_2 = arith.constant 0 : index
    %1 = vector.load %arg2[%c0_1, %c0_2] : memref<2048x32xbf16, #tpu.memory_space<vmem>>, vector<2048x32xbf16>
    %cst = arith.constant dense<0.000000e+00> : vector<16x32xf32>
    %2 = tpu.matmul %0, %1, %cst {dimension_numbers = #tpu.dot_dimension_numbers<[1], [0], [0], [1], [0, 0, 1, 1], [], []>} : vector<16x2048xbf16>, vector<2048x32xbf16>, vector<16x32xf32> -> vector<16x32xf32>
    %c0_3 = arith.constant 0 : index
    %c0_4 = arith.constant 0 : index
    %3 = vector.load %arg3[%c0_3, %c0_4] : memref<1x32xf32, #tpu.memory_space<vmem>>, vector<1x32xf32>
    %4 = vector.broadcast %3 : vector<1x32xf32> to vector<16x32xf32>
    %5 = arith.addf %2, %4 : vector<16x32xf32>
    %c0_5 = arith.constant 0 : index
    %c0_6 = arith.constant 0 : index
    %6 = vector.load %arg4[%c0_5, %c0_6] : memref<16x32xbf16, #tpu.memory_space<vmem>>, vector<16x32xbf16>
    %7 = arith.extf %6 : vector<16x32xbf16> to vector<16x32xf32>
    %8 = arith.addf %5, %7 : vector<16x32xf32>
    %cst_7 = arith.constant dense<0.000000e+00> : vector<16xf32>
    %9 = vector.multi_reduction <add>, %8, %cst_7 [1] : vector<16x32xf32> to vector<16xf32>
    %10 = vector.shape_cast %9 : vector<16xf32> to vector<16x1xf32>
    %cst_8 = arith.constant 3.200000e+01 : f32
    %11 = vector.broadcast %cst_8 : f32 to vector<16x1xf32>
    %12 = arith.divf %10, %11 : vector<16x1xf32>
    %13 = vector.broadcast %12 : vector<16x1xf32> to vector<16x32xf32>
    %14 = arith.subf %8, %13 : vector<16x32xf32>
    %15 = arith.mulf %14, %14 : vector<16x32xf32>
    %cst_9 = arith.constant dense<0.000000e+00> : vector<16xf32>
    %16 = vector.multi_reduction <add>, %15, %cst_9 [1] : vector<16x32xf32> to vector<16xf32>
    %17 = vector.shape_cast %16 : vector<16xf32> to vector<16x1xf32>
    %cst_10 = arith.constant 3.200000e+01 : f32
    %18 = vector.broadcast %cst_10 : f32 to vector<16x1xf32>
    %19 = arith.divf %17, %18 : vector<16x1xf32>
    %20 = vector.broadcast %12 : vector<16x1xf32> to vector<16x32xf32>
    %21 = arith.subf %8, %20 : vector<16x32xf32>
    %cst_11 = arith.constant 9.99999974E-6 : f32
    %22 = vector.broadcast %cst_11 : f32 to vector<16x1xf32>
    %23 = arith.addf %19, %22 : vector<16x1xf32>
    %24 = math.rsqrt %23 : vector<16x1xf32>
    %25 = vector.broadcast %24 : vector<16x1xf32> to vector<16x32xf32>
    %26 = arith.mulf %21, %25 : vector<16x32xf32>
    %c0_12 = arith.constant 0 : index
    %c0_13 = arith.constant 0 : index
    %27 = vector.load %arg5[%c0_12, %c0_13] : memref<1x32xf32, #tpu.memory_space<vmem>>, vector<1x32xf32>
    %28 = vector.broadcast %27 : vector<1x32xf32> to vector<16x32xf32>
    %29 = arith.mulf %26, %28 : vector<16x32xf32>
    %c0_14 = arith.constant 0 : index
    %c0_15 = arith.constant 0 : index
    %30 = vector.load %arg6[%c0_14, %c0_15] : memref<1x32xf32, #tpu.memory_space<vmem>>, vector<1x32xf32>
    %31 = vector.broadcast %30 : vector<1x32xf32> to vector<16x32xf32>
    %32 = arith.addf %29, %31 : vector<16x32xf32>
    %33 = arith.truncf %32 : vector<16x32xf32> to vector<16x32xbf16>
    %c0_16 = arith.constant 0 : index
    %c0_17 = arith.constant 0 : index
    %34 = vector.load %arg7[%c0_16, %c0_17] : memref<16x32xbf16, #tpu.memory_space<vmem>>, vector<16x32xbf16>
    tpu.vector_store %arg7[%c0_16, %c0_17], %33 {strides = array<i32>} : memref<16x32xbf16, #tpu.memory_space<vmem>>, vector<16x32xbf16>,
    return
  }
  func.func @transform_0(%arg0: i32) -> (i32, i32) {
    %c0_i32 = arith.constant 0 : i32
    %c0_i32_0 = arith.constant 0 : i32
    return %arg0, %c0_i32 : i32, i32
  }
  func.func @transform_1(%arg0: i32) -> (i32, i32) {
    %c0_i32 = arith.constant 0 : i32
    %c0_i32_0 = arith.constant 0 : i32
    %c0_i32_1 = arith.constant 0 : i32
    return %c0_i32, %c0_i32_0 : i32, i32
  }
  func.func @transform_2(%arg0: i32) -> (i32, i32) {
    %c0_i32 = arith.constant 0 : i32
    %c0_i32_0 = arith.constant 0 : i32
    %c0_i32_1 = arith.constant 0 : i32
    return %c0_i32, %c0_i32_0 : i32, i32
  }
  func.func @transform_3(%arg0: i32) -> (i32, i32) {
    %c0_i32 = arith.constant 0 : i32
    %c0_i32_0 = arith.constant 0 : i32
    return %arg0, %c0_i32 : i32, i32
  }
  func.func @transform_4(%arg0: i32) -> (i32, i32) {
    %c0_i32 = arith.constant 0 : i32
    %c0_i32_0 = arith.constant 0 : i32
    %c0_i32_1 = arith.constant 0 : i32
    return %c0_i32, %c0_i32_0 : i32, i32
  }
  func.func @transform_5(%arg0: i32) -> (i32, i32) {
    %c0_i32 = arith.constant 0 : i32
    %c0_i32_0 = arith.constant 0 : i32
    %c0_i32_1 = arith.constant 0 : i32
    return %c0_i32, %c0_i32_0 : i32, i32
  }
  func.func @transform_6(%arg0: i32) -> (i32, i32) {
    %c0_i32 = arith.constant 0 : i32
    %c0_i32_0 = arith.constant 0 : i32
    return %arg0, %c0_i32 : i32, i32
  }
}

module attributes {stable_mosaic.version = 11 : i64} {
  func.func @_linear_kernel(%arg0: i32, %arg1: i32, %arg2: memref<16x32xbf16, #tpu.memory_space<vmem>>, %arg3: memref<32x128xbf16, #tpu.memory_space<vmem>>, %arg4: memref<1x128xf32, #tpu.memory_space<vmem>>, %arg5: memref<16x128xbf16, #tpu.memory_space<vmem>>) attributes {dimension_semantics = [#tpu.dimension_semantics<parallel>, #tpu.dimension_semantics<parallel>], iteration_bounds = array<i64: 1, 1>, scalar_prefetch = 0 : i64, scratch_operands = 0 : i64, tpu.core_type = #tpu.core_type<tc>, window_params = [{transform_indices = @transform_0, window_bounds = array<i64: 16, 32>}, {transform_indices = @transform_1, window_bounds = array<i64: 32, 128>}, {transform_indices = @transform_2, window_bounds = array<i64: 1, 128>}, {transform_indices = @transform_3, window_bounds = array<i64: 16, 128>}]} {
    %c0 = arith.constant 0 : index
    %c0_0 = arith.constant 0 : index
    %0 = vector.load %arg2[%c0, %c0_0] : memref<16x32xbf16, #tpu.memory_space<vmem>>, vector<16x32xbf16>
    %c0_1 = arith.constant 0 : index
    %c0_2 = arith.constant 0 : index
    %1 = vector.load %arg3[%c0_1, %c0_2] : memref<32x128xbf16, #tpu.memory_space<vmem>>, vector<32x128xbf16>
    %cst = arith.constant dense<0.000000e+00> : vector<16x128xf32>
    %2 = tpu.matmul %0, %1, %cst {dimension_numbers = #tpu.dot_dimension_numbers<[1], [0], [0], [1], [0, 0, 1, 1], [], []>} : vector<16x32xbf16>, vector<32x128xbf16>, vector<16x128xf32> -> vector<16x128xf32>
    %c0_3 = arith.constant 0 : index
    %c0_4 = arith.constant 0 : index
    %3 = vector.load %arg4[%c0_3, %c0_4] : memref<1x128xf32, #tpu.memory_space<vmem>>, vector<1x128xf32>
    %4 = vector.broadcast %3 : vector<1x128xf32> to vector<16x128xf32>
    %5 = arith.addf %2, %4 : vector<16x128xf32>
    %6 = arith.truncf %5 : vector<16x128xf32> to vector<16x128xbf16>
    %c0_5 = arith.constant 0 : index
    %c0_6 = arith.constant 0 : index
    %7 = vector.load %arg5[%c0_5, %c0_6] : memref<16x128xbf16, #tpu.memory_space<vmem>>, vector<16x128xbf16>
    tpu.vector_store %arg5[%c0_5, %c0_6], %6 {strides = array<i32>} : memref<16x128xbf16, #tpu.memory_space<vmem>>, vector<16x128xbf16>,
    return
  }
  func.func @transform_0(%arg0: i32, %arg1: i32) -> (i32, i32) {
    %c0_i32 = arith.constant 0 : i32
    %c0_i32_0 = arith.constant 0 : i32
    return %arg1, %c0_i32 : i32, i32
  }
  func.func @transform_1(%arg0: i32, %arg1: i32) -> (i32, i32) {
    %c0_i32 = arith.constant 0 : i32
    %c0_i32_0 = arith.constant 0 : i32
    return %c0_i32, %arg0 : i32, i32
  }
  func.func @transform_2(%arg0: i32, %arg1: i32) -> (i32, i32) {
    %c0_i32 = arith.constant 0 : i32
    %c0_i32_0 = arith.constant 0 : i32
    return %c0_i32, %arg0 : i32, i32
  }
  func.func @transform_3(%arg0: i32, %arg1: i32) -> (i32, i32) {
    %c0_i32 = arith.constant 0 : i32
    return %arg1, %arg0 : i32, i32
  }
}

</mosaic_0001>

<bundles_post_ra>
// kernel: bert_forward.12
= control target key start
LH: loop header
LB: loop body
LE: loop exit
PB: predicated region body
PF: predicated region fallthrough
CT: control target
= control target key end

     0   :  { %s733_s15 = smov 0   ;;  %s735_s16 = smov 0   ;;  %s810_s0 = inlined_call_operand.vmem [shape: bf16[2,4,8,8], index: 0, kind: input, shape index: {}]   ;;  %s811_s1 = inlined_call_operand.vmem [shape: bf16[2,4,8,8], index: 1, kind: input, shape index: {}]   ;;  %s812_s2 = inlined_call_operand.vmem [shape: bf16[2,4,8,8], index: 2, kind: input, shape index: {}]   ;;  %s813_s3 = inlined_call_operand.vmem [shape: f32[2,1,8], index: 3, kind: input, shape index: {}]   ;;  %s814_s4 = inlined_call_operand.vmem [shape: bf16[2,4,8,8], index: 4, kind: output, shape index: {}]  }
   0x1   :  { %s737_s17 = smov 0   ;;  %s739_s18 = smov 0  }
   0x2   :  { %s741_s19 = smov 0  }
   0x3 LB: > { %s29_s20 = sadd.s32 1, %s695_s17  ;;  %s33_s21 = sadd.s32 1, %s699_s18  ;;  %s703_s19 = sphi %s741_s19, %s14_s19   ;;  %s699_s18 = sphi %s739_s18, %s818_s18   ;;  %s695_s17 = sphi %s737_s17, %s817_s17   ;;  %s691_s16 = sphi %s735_s16, %s816_s16   ;;  %s687_s15 = sphi %s733_s15, %s815_s15  }
   0x4   : > { %p31_p0 = scmp.ge.s32.totalorder %s29_s20, 4  ;;  %p599_p1 = scmp.ge.s32.totalorder %s703_s19, 1 }
   0x5   : > { %p241_p2 = scmp.lt.s32.totalorder %s703_s19, 9 }
   0x6   : > { %s820_s20 = smov (%p31_p0, %s29_s20), 0  ;;  %s822_s21 = smov (!%p31_p0, %s33_s21), %s699_s18 }
   0x7   : > { %p242_p3 = pnand %p599_p1, %p241_p2  ;;  %p35_p4 = scmp.ge.s32.totalorder %s822_s21, 2 }
   0x8   : > { %p301_p5 = scmp.lt.s32.totalorder (!%p242_p3), %s691_s16, 1  ;;  %p303_p6 = scmp.lt.s32.totalorder (!%p242_p3), %s687_s15, 3 }
   0x9   : > { %s824_s21 = smov (%p35_p4, %s822_s21), 0  ;;  %245 = sbr.rel (%p242_p3) target bundleno = 631 (0x277), region = 36 }
   0xe   : > { %s826_s16 = smov (!%p301_p5, %s691_s16), 1  ;;  %s828_s15 = smov (!%p303_p6, %s687_s15), 3  ;;  %vm353_vm0 = vcmask 64512   ;;  %vm350_vm1 = vcmask 7168   ;;  %v705_v3 = vmov -inf   ;;  %v706_v9 = vmov 0  }
   0xf   : > { %s600_s22 = sshll.u32 %s826_s16, 2  ;;  %s336_s25 = scalar_lea.vmem %s813_s3, %s826_s16  ;;  %351 = vst.msk [vmem:[#allocation2] sm:$0xff] %vm350_vm1, %v705_v3  ;;  %655 = vset.pattern.permute.xlu0 %v706_v9  ;;  %656 = vset.pattern.permute.xlu1 %v706_v9  ;;  %v707_v10 = vmov 0.0   ;;  %vm417_vm2 = vcmask 1043456   ;;  %vm450_vm3 = vcmask 60416  }
  0x10   : > { %s306_s26 = sadd.s32 %s600_s22, %s828_s15  ;;  %v658_v4 = vld [vmem:[%s336_s25] ss:$0 sm:$0xff]  ;;  %657 = vset.pattern.permute.xlu2 %v706_v9  ;;  %352 = vst.msk [vmem:[#allocation3] sm:$0xff] %vm350_vm1, %v707_v10 }
  0x11   : > { %s766_s27 = sshll.u32 %s306_s26, 2  ;;  %354 = vst.msk [vmem:[#allocation4] sm:$0xff] %vm353_vm0, %v707_v10 }
  0x12   : > { %s319_s30 = scalar_lea.vmem %s811_s1, %s766_s27  ;;  %s308_s7 = scalar_lea.vmem %s810_s0, %s766_s27 }
  0x13   : > { %v356_v0 = vld [vmem:[%s319_s30] sm:$0xf]  ;;  %s330_s10 = scalar_lea.vmem %s812_s2, %s766_s27  ;;  %s344_s13 = scalar_lea.vmem %s814_s4, %s766_s27 }
  0x14   : > { %v367_v1 = vsel %vm353_vm0, %v356_v0, 0  ;;  %v355_v2 = vld [vmem:[%s308_s7] sm:$0xf] }
  0x15   : > { %376 = vmatpush.bf16.xpose.msra.mxu0 %v367_v1  ;;  %v357_v15 = vld [vmem:[%s330_s10] sm:$0xf] }
  0x16   : > { %v382_v11 = vld [vmem:[#allocation2] sm:$0xff]  ;;  %v419_v16 = vsel %vm417_vm2, %v357_v15, 0 }
  0x17   : > { %428 = vmatpush.bf16.msra.mxu1 %v419_v16  ;;  %v398_v25 = vld [vmem:[#allocation3] sm:$0xff] }
  0x18   : > { %v406_v33 = vld [vmem:[#allocation4] sm:$0xff] }
  0x1c   : > { %608 = vmatmul.msk.bf16.vlgmr.msra.gmra.mxu0 %vm353_vm0, %v355_v2 }
  0x99   : > { %v378_v5 = vpop.f32.mrf.mxu0 }
  0x9a   : > { %v379_v6 = vadd.f32 %v658_v4, %v378_v5 }
  0x9c   : > { %v383_v7 = vsel %vm353_vm0, %v379_v6, -inf }
  0x9d   : > { %384 = vmax.xlane.f32.xlu0 %v383_v7 }
  0xa1   : > { %v380_v8 = vpop.f32.mrf.mxu0 }
 0x110   : > { %v385_v12 = vpop.xlane.xlu0 %384 }
 0x111   : > { %v386_v13 = vmax.f32 %v382_v11, %v385_v12 }
 0x113   : > { %v387_v14 = vsub.f32 %v382_v11, %v386_v13  ;;  %436 = vst.msk [vmem:[#allocation2] sm:$0xff] %vm350_vm1, %v386_v13  ;;  %392 = vperm.xlu0 %655, %v386_v13  }
 0x115   : > { %v388_v23 = vmul.f32 1.442695, %v387_v14 }
 0x185   : > { %v393_v17 = vpop.permute.xlu0 %392 }
 0x186   : > { %v395_v18 = vsub.f32 %v379_v6, %v393_v17 }
 0x188   : > { %v396_v19 = vmul.f32 1.442695, %v395_v18 }
 0x18a   : > { %659 = vpow2.f32 %v396_v19 }
 0x18b   : > { %661 = vpow2.f32 %v388_v23 }
 0x190   : > { %v660_v20 = vpop.eup %659 }
 0x191   : > { %v400_v21 = vsel %vm353_vm0, %v660_v20, 0.0  ;;  %v413_v22 = vpack.c.bf16 %v660_v20, %v660_v20  ;;  %v662_v24 = vpop.eup %661 }
 0x192   : > { %401 = vadd.xlane.f32.xlu1 %v400_v21  ;;  %v399_v26 = vmul.f32 %v662_v24, %v398_v25 }
 0x193   : > { %609 = vmatmul.msk.bf16.vlgmr.msra.gmra.mxu1 %vm353_vm0, %v413_v22 }
 0x1ab   : > { %409 = vperm.xlu1 %656, %v662_v24  }
 0x205   : > { %v402_v27 = vpop.xlane.xlu1 %401 }
 0x206   : > { %v403_v28 = vadd.f32 %v402_v27, %v399_v26 }
 0x208   : > { %405 = vst.msk [vmem:[#allocation3] sm:$0xff] %vm350_vm1, %v403_v28 }
 0x20f   : > { %v441_v29 = vld [vmem:[#allocation3] sm:$0xff] }
 0x210   : > { %v430_v30 = vpop.f32.mrf.mxu1  ;;  %663 = vrcp.f32 %v441_v29 }
 0x216   : > { %v664_v31 = vpop.eup %663 }
 0x217   : > { %445 = vperm.xlu2 %657, %v664_v31  }
 0x218   : > { %v432_v32 = vpop.f32.mrf.mxu1 }
 0x21d   : > { %v410_v34 = vpop.permute.xlu1 %409 }
 0x21e   : > { %v412_v35 = vmul.f32 %v410_v34, %v406_v33 }
 0x220   : > { %v434_v36 = vadd.f32 %v430_v30, %v412_v35 }
 0x222   : > { %435 = vst.msk [vmem:[#allocation4] sm:$0xff] %vm353_vm0, %v434_v36 }
 0x229   : > { %v440_v37 = vld [vmem:[#allocation4] sm:$0xff] }
 0x271   : > { %v446_v38 = vpop.permute.xlu2 %445 }
 0x272   : > { %v448_v39 = vmul.f32 %v446_v38, %v440_v37 }
 0x274   : > { %v449_v40 = vpack.c.bf16 %v448_v39, %v448_v39 }
 0x276   : > { %451 = vst.msk [vmem:[%s344_s13] sm:$0xf] %vm450_vm3, %v449_v40 }
 0x277 PF: > { %s14_s19 = sadd.s32 1, %s703_s19   ;;  %s815_s15 = smov %s695_s17 }
 0x278   : > { %p11_p7 = scmp.ge.s32.totalorder %s14_s19, 10   ;;  %s816_s16 = smov %s699_s18 }
 0x279   : > { %s817_s17 = smov %s820_s20  ;;  %s818_s18 = smov %s824_s21 }
 0x27a   :  { %13 = sbr.rel (!%p11_p7) target bundleno = 3 (0x3), region = 83 }

// kernel: bert_forward.11
= control target key start
LH: loop header
LB: loop body
LE: loop exit
PB: predicated region body
PF: predicated region fallthrough
CT: control target
= control target key end

     0   :  { %vm42_vm0 = vcmask 261120   ;;  %vm62_vm1 = vcmask 781312   ;;  %s124_s1 = inlined_call_operand.vmem [shape: bf16[32,96], index: 1, kind: input, shape index: {}]   ;;  %s125_s2 = inlined_call_operand.vmem [shape: f32[1,96], index: 2, kind: input, shape index: {}]   ;;  %s126_s0 = inlined_call_operand.vmem [shape: bf16[16,32], index: 0, kind: input, shape index: {}]   ;;  %s127_s3 = inlined_call_operand.vmem [shape: bf16[16,96], index: 3, kind: output, shape index: {}]  }
   0x1   :  { %v84_v0 = vld [vmem:[%s124_s1 + $0x8] sm:$0xff]  ;;  %v83_v1 = vld [vmem:[%s124_s1] sm:$0xff] }
   0x2   :  { %52 = vmatpush.bf16.msra.mxu0 %v84_v0  ;;  %v82_v2 = vld [vmem:[%s126_s0] sm:$0xff] }
   0x3   :  { %v85_v3 = vld [vmem:[%s125_s2] ss:$0 sm:$0xff] }
   0x6   :  { %53 = vmatpush.bf16.msra.mxu0 %v83_v1 }
   0x9   :  { %81 = vmatmul.msk.bf16.vlgmr.msra.gmra.mxu0 %vm42_vm0, %v82_v2 }
  0x86   :  { %v55_v4 = vpop.f32.mrf.mxu0 }
  0x87   :  { %v56_v5 = vadd.f32 %v85_v3, %v55_v4 }
  0x89   :  { %v60_v6 = vpack.c.bf16 %v56_v5, %v56_v5 }
  0x8b   :  { %63 = vst.msk [vmem:[%s127_s3] sm:$0xf] %vm62_vm1, %v60_v6 }
  0x8e   :  { %v57_v7 = vpop.f32.mrf.mxu0 }
  0x8f   :  { %v58_v8 = vadd.f32 %v85_v3, %v57_v7 }
  0x91   :  { %v61_v9 = vpack.c.bf16 %v58_v8, %v58_v8 }
  0x93   :  { %64 = vst.msk [vmem:[%s127_s3 + $0x4] sm:$0xf] %vm62_vm1, %v61_v9 }

// kernel: bert_forward.13
= control target key start
LH: loop header
LB: loop body
LE: loop exit
PB: predicated region body
PF: predicated region fallthrough
CT: control target
= control target key end

     0   :  { %vm51_vm0 = vcmask 261120   ;;  %v177_v15 = vmov 32.0   ;;  %vm140_vm6 = vcmask 257024   ;;  %s245_s1 = inlined_call_operand.vmem [shape: bf16[32,32], index: 1, kind: input, shape index: {}]   ;;  %s246_s2 = inlined_call_operand.vmem [shape: f32[1,32], index: 2, kind: input, shape index: {}]   ;;  %s247_s0 = inlined_call_operand.vmem [shape: bf16[16,32], index: 0, kind: input, shape index: {}]   ;;  %s248_s3 = inlined_call_operand.vmem [shape: bf16[16,32], index: 3, kind: input, shape index: {}]   ;;  %s249_s4 = inlined_call_operand.vmem [shape: f32[1,32], index: 4, kind: input, shape index: {}]   ;;  %s250_s5 = inlined_call_operand.vmem [shape: f32[1,32], index: 5, kind: input, shape index: {}]   ;;  %s251_s6 = inlined_call_operand.vmem [shape: bf16[16,32], index: 6, kind: output, shape index: {}]  }
   0x1   :  { %v162_v0 = vld [vmem:[%s245_s1 + $0x8] sm:$0xff]  ;;  %v161_v1 = vld [vmem:[%s245_s1] sm:$0xff]  ;;  %171 = vrcp.f32 %v177_v15 }
   0x2   :  { %61 = vmatpush.bf16.msra.mxu0 %v162_v0  ;;  %v160_v2 = vld [vmem:[%s247_s0] sm:$0xff] }
   0x3   :  { %v164_v3 = vld [vmem:[%s248_s3] sm:$0xff]  }
   0x4   :  { %v168_v4 = vld [vmem:[%s246_s2] ss:$0 sm:$0xff]  ;;  %v165_v5 = vunpack.c.l.bf16 %v164_v3  ;;  %v166_v10 = vunpack.c.h.bf16 %v164_v3 }
   0x5   :  { %v169_v46 = vld [vmem:[%s249_s4] ss:$0 sm:$0xff] }
   0x6   :  { %62 = vmatpush.bf16.msra.mxu0 %v161_v1  ;;  %v170_v49 = vld [vmem:[%s250_s5] ss:$0 sm:$0xff] }
   0x7   :  { %v172_v16 = vpop.eup %171 }
   0x8   :  { %v82_v17 = vmul.f32 32.0, %v172_v16  ;;  %vm86_vm1 = vweird.f32 %v172_v16 }
   0x9   :  { %159 = vmatmul.msk.bf16.vlgmr.msra.gmra.mxu0 %vm51_vm0, %v160_v2 }
   0xa   :  { %v83_v18 = vsub.f32 1.0, %v82_v17 }
   0xc   :  { %v84_v19 = vmul.f32 %v172_v16, %v83_v18 }
   0xe   :  { %v85_v20 = vadd.f32 %v172_v16, %v84_v19 }
  0x10   :  { %v87_v21 = vsel %vm86_vm1, %v172_v16, %v85_v20 }
  0x86   :  { %v64_v6 = vpop.f32.mrf.mxu0 }
  0x87   :  { %v65_v7 = vadd.f32 %v168_v4, %v64_v6 }
  0x89   :  { %v73_v8 = vadd.f32 %v165_v5, %v65_v7 }
  0x8b   :  { %v75_v9 = vsel %vm51_vm0, %v73_v8, 0.0 }
  0x8c   :  { %76 = vadd.xlane.f32.xlu0 %v75_v9 }
  0x8e   :  { %v66_v11 = vpop.f32.mrf.mxu0 }
  0x8f   :  { %v67_v12 = vadd.f32 %v168_v4, %v66_v11 }
  0x91   :  { %v74_v13 = vadd.f32 %v166_v10, %v67_v12 }
  0x93   :  { %v78_v14 = vsel %vm51_vm0, %v74_v13, 0.0 }
  0x94   :  { %79 = vadd.xlane.f32.xlu0 %v78_v14 }
  0xff   :  { %v77_v22 = vpop.xlane.xlu0 %76 }
 0x100   :  { %v88_v23 = vmul.f32 %v87_v21, %v77_v22 }
 0x102   :  { %v90_v24 = vsub.f32 %v73_v8, %v88_v23 }
 0x104   :  { %v92_v25 = vmul.f32 %v90_v24, %v90_v24 }
 0x106   :  { %v94_v26 = vsel %vm51_vm0, %v92_v25, 0.0 }
 0x107   :  { %95 = vadd.xlane.f32.xlu1 %v94_v26  ;;  %v80_v27 = vpop.xlane.xlu0 %79 }
 0x108   :  { %v89_v28 = vmul.f32 %v87_v21, %v80_v27 }
 0x10a   :  { %v91_v29 = vsub.f32 %v74_v13, %v89_v28 }
 0x10c   :  { %v93_v30 = vmul.f32 %v91_v29, %v91_v29 }
 0x10e   :  { %v97_v31 = vsel %vm51_vm0, %v93_v30, 0.0 }
 0x10f   :  { %98 = vadd.xlane.f32.xlu1 %v97_v31 }
 0x17a   :  { %v96_v32 = vpop.xlane.xlu1 %95 }
 0x17b   :  { %v100_v33 = vmul.f32 %v96_v32, %v87_v21 }
 0x17d   :  { %v102_v34 = vadd.f32 1e-05, %v100_v33 }
 0x17f   :  { %173 = vrsqrt.f32 %v102_v34  ;;  %vm110_vm3 = vweird.f32 %v102_v34 }
 0x182   :  { %v99_v35 = vpop.xlane.xlu1 %98 }
 0x183   :  { %v101_v36 = vmul.f32 %v99_v35, %v87_v21 }
 0x185   :  { %v174_v37 = vpop.eup %173  ;;  %v103_v38 = vadd.f32 1e-05, %v101_v36 }
 0x186   :  { %v105_v39 = vmul.f32 %v174_v37, %v102_v34  ;;  %vm111_vm2 = vweird.f32 %v174_v37 }
 0x187   :  { %175 = vrsqrt.f32 %v103_v38  ;;  %vm112_vm4 = vmor %vm110_vm3, %vm111_vm2  ;;  %vm120_vm7 = vweird.f32 %v103_v38 }
 0x188   :  { %v106_v40 = vmul.f32 %v174_v37, %v105_v39 }
 0x18a   :  { %v107_v41 = vmul.f32 0.5, %v106_v40 }
 0x18c   :  { %v108_v42 = vsub.f32 1.5, %v107_v41 }
 0x18d   :  { %v176_v43 = vpop.eup %175 }
 0x18e   :  { %v109_v44 = vmul.f32 %v174_v37, %v108_v42  ;;  %v115_v45 = vmul.f32 %v176_v43, %v103_v38  ;;  %vm121_vm5 = vweird.f32 %v176_v43 }
 0x18f   :  { %vm122_vm8 = vmor %vm120_vm7, %vm121_vm5 }
 0x190   :  { %v113_v47 = vsel %vm112_vm4, %v174_v37, %v109_v44  ;;  %v116_v48 = vmul.f32 %v176_v43, %v115_v45 }
 0x191   :  { %v124_v50 = vmul.f32 %v113_v47, %v90_v24 }
 0x192   :  { %v117_v51 = vmul.f32 0.5, %v116_v48 }
 0x193   :  { %v130_v52 = vmul.f32 %v169_v46, %v124_v50 }
 0x194   :  { %v118_v53 = vsub.f32 1.5, %v117_v51 }
 0x195   :  { %v136_v54 = vadd.f32 %v170_v49, %v130_v52 }
 0x196   :  { %v119_v55 = vmul.f32 %v176_v43, %v118_v53 }
 0x197   :  { %v138_v56 = vpack.c.bf16 %v136_v54, %v136_v54 }
 0x198   :  { %v123_v57 = vsel %vm122_vm8, %v176_v43, %v119_v55 }
 0x199   :  { %141 = vst.msk [vmem:[%s251_s6] sm:$0xf] %vm140_vm6, %v138_v56  ;;  %v125_v58 = vmul.f32 %v123_v57, %v91_v29 }
 0x19b   :  { %v131_v59 = vmul.f32 %v169_v46, %v125_v58 }
 0x19d   :  { %v137_v60 = vadd.f32 %v170_v49, %v131_v59 }
 0x19f   :  { %v139_v61 = vpack.c.bf16 %v137_v60, %v137_v60 }
 0x1a1   :  { %142 = vst.msk [vmem:[%s251_s6 + $0x4] sm:$0xf] %vm140_vm6, %v139_v61 }

// kernel: bert_forward.14
= control target key start
LH: loop header
LB: loop body
LE: loop exit
PB: predicated region body
PF: predicated region fallthrough
CT: control target
= control target key end

     0   :  { %s695_s12 = smov 0   ;;  %s697_s13 = smov 0   ;;  %s788_s0 = inlined_call_operand.vmem [shape: bf16[16,32], index: 0, kind: input, shape index: {}]   ;;  %s789_s1 = inlined_call_operand.vmem [shape: bf16[32,2048], index: 1, kind: input, shape index: {}]   ;;  %s790_s2 = inlined_call_operand.vmem [shape: f32[1,2048], index: 2, kind: input, shape index: {}]   ;;  %s791_s3 = inlined_call_operand.vmem [shape: bf16[16,2048], index: 3, kind: output, shape index: {}]  }
   0x1   :  { %s699_s14 = smov 0   ;;  %s701_s15 = smov 0  }
   0x2   :  { %s703_s16 = smov 0  }
   0x3 LB: > { %s25_s17 = sadd.s32 1, %s669_s15  ;;  %s527_s18 = sadd.s32 4294967295, %s673_s16   ;;  %s673_s16 = sphi %s703_s16, %s13_s16   ;;  %s669_s15 = sphi %s701_s15, %s796_s15   ;;  %s665_s14 = sphi %s699_s14, %s795_s14   ;;  %s661_s13 = sphi %s697_s13, %s794_s13   ;;  %s657_s12 = sphi %s695_s12, %s793_s12  }
   0x4   : > { %p27_p0 = scmp.ge.s32.totalorder %s25_s17, 4  ;;  %p65_p1 = scmp.ne.s32.totalorder %s661_s13, %s657_s12 }
   0x5   : > { %p66_p2 = scmp.eq.s32.totalorder %s673_s16, 0  ;;  %p123_p4 = scmp.eq.s32.totalorder %s527_s18, 3 }
   0x6   : > { %s798_s17 = smov (%p27_p0, %s25_s17), 0  ;;  %s58_s20 = sadd.s32 1, %s661_s13 }
   0x7   : > { %p67_p3 = por %p66_p2, %p65_p1  ;;  %s55_s19 = ssub.s32 %s669_s15, %s798_s17 }
   0x8   : > { %p56_p5 = scmp.eq.s32.totalorder %s55_s19, 0  ;;  %p730_p6 = por %p123_p4, %p65_p1 }
   0x9   : > { %p531_p7 = scmp.ge.s32.totalorder %s673_s16, 4 }
   0xa   : > { %s735_s22 = scalar_select %p56_p5, %s661_s13, %s58_s20  }
   0xb   : > { %154 = sbr.rel (%p531_p7) target bundleno = 28 (0x1c), region = 20 }
  0x10   : > { %157 = sbr.rel (!%p67_p3) target bundleno = 28 (0x1c), region = 24  ;;  %s159_s23 = sand.u32 (%p67_p3), 1, %s661_s13  }
  0x11   : > { %s584_s24 = sshll.u32 (%p67_p3), %s669_s15, 4  ;;  %s532_s25 = sshll.u32 (%p67_p3), %s159_s23, 6 }
  0x12   : > { %s164_s28 = scalar_lea.vmem (%p67_p3), %s789_s1, %s584_s24  ;;  %s161_s29 = scalar_lea.vmem (%p67_p3), [#allocation2], %s532_s25 }
  0x13   : > { %v177_v0 = vld [vmem:[%s164_s28] sm:$0xff] (%p67_p3)  ;;  %v179_v1 = vld [vmem:[%s164_s28 + $0x8] sm:$0xff] (%p67_p3) }
  0x14   : > { %v181_v2 = vld [vmem:[%s164_s28 + $0x40] sm:$0xff] (%p67_p3)  ;;  %178 = vst [vmem:[%s161_s29] sm:$0xff] (%p67_p3), %v177_v0  ;;  %v183_v3 = vld [vmem:[%s164_s28 + $0x48] sm:$0xff] (%p67_p3) }
  0x15   : > { %180 = vst [vmem:[%s161_s29 + $0x8] sm:$0xff] %v179_v1  ;;  %v185_v4 = vld [vmem:[%s164_s28 + $0x80] sm:$0xff]  ;;  %v187_v5 = vld [vmem:[%s164_s28 + $0x88] sm:$0xff] }
  0x16   : > { %182 = vst [vmem:[%s161_s29 + $0x10] sm:$0xff] %v181_v2  ;;  %v189_v6 = vld [vmem:[%s164_s28 + $0xc0] sm:$0xff]  ;;  %v191_v7 = vld [vmem:[%s164_s28 + $0xc8] sm:$0xff] }
  0x17   : > { %184 = vst [vmem:[%s161_s29 + $0x18] sm:$0xff] %v183_v3 }
  0x18   : > { %186 = vst [vmem:[%s161_s29 + $0x20] sm:$0xff] %v185_v4 }
  0x19   : > { %188 = vst [vmem:[%s161_s29 + $0x28] sm:$0xff] %v187_v5 }
  0x1a   : > { %190 = vst [vmem:[%s161_s29 + $0x30] sm:$0xff] %v189_v6 }
  0x1b   : > { %192 = vst [vmem:[%s161_s29 + $0x38] sm:$0xff] %v191_v7 }
  0x1c PF: > { %p535_p8 = scmp.ge.s32.totalorder %s673_s16, 1  ;;  %p205_p9 = scmp.lt.s32.totalorder %s673_s16, 5 }
  0x1e   : > { %p206_p10 = pnand %p535_p8, %p205_p9 }
  0x1f   : > { %s212_s30 = sand.u32 (!%p206_p10), 1, %s657_s12   ;;  %s538_s8 = sshll.u32 (!%p206_p10), %s665_s14, 2 }
  0x20   : > { %209 = sbr.rel (%p206_p10) target bundleno = 204 (0xcc), region = 51  ;;  %s536_s4 = sshll.u32 (!%p206_p10), %s212_s30, 6 }
  0x21   : > { %s214_s5 = scalar_lea.vmem (!%p206_p10), [#allocation2], %s536_s4  ;;  %p251_p11 = scmp.lt.s32.totalorder (!%p206_p10), %s538_s8, 15 }
  0x22   : > { %s537_s18 = sshll.u32 (!%p206_p10), %s212_s30, 5 }
  0x23   : > { %s757_s19 = scalar_lea.vmem (!%p206_p10), [#allocation3], %s537_s18 }
  0x25   : > { %v561_v8 = vld [vmem:[%s214_s5 + $0x20] sm:$0xf]  ;;  %v592_v9 = vld [vmem:[%s214_s5 + $0x2c] sm:$0xf0]  ;;  %v590_v10 = vld [vmem:[%s214_s5 + $0x24] sm:$0xf] }
  0x26   : > { %v562_v11 = vor.u32 %v592_v9, %v561_v8  ;;  %v563_v12 = vld [vmem:[%s214_s5 + $0x30] sm:$0xf0]  ;;  %v569_v13 = vld [vmem:[%s214_s5 + $0x28] sm:$0xf]  ;;  %v593_v14 = vld [vmem:[%s214_s5 + $0x34] sm:$0xf0] }
  0x27   : > { %v566_v15 = vor.u32 %v590_v10, %v563_v12  ;;  %v570_v16 = vor.u32 %v593_v14, %v569_v13  ;;  %v591_v17 = vld [vmem:[%s214_s5 + $0x2c] sm:$0xf]  ;;  %v571_v18 = vld [vmem:[%s214_s5 + $0x38] sm:$0xf0]  ;;  %v545_v19 = vld [vmem:[%s214_s5] sm:$0xf] }
  0x28   : > { %333 = vmatpush.bf16.msra.mxu0 %v562_v11  ;;  %v574_v20 = vor.u32 %v591_v17, %v571_v18  ;;  %v588_v21 = vld [vmem:[%s214_s5 + $0xc] sm:$0xf0]  ;;  %v586_v22 = vld [vmem:[%s214_s5 + $0x4] sm:$0xf]  ;;  %v547_v23 = vld [vmem:[%s214_s5 + $0x10] sm:$0xf0] }
  0x29   : > { %347 = vmatpush.bf16.msra.mxu1 %v566_v15  ;;  %361 = vmatpush.bf16.msra.mxu2 %v570_v16  ;;  %v546_v24 = vor.u32 %v588_v21, %v545_v19  ;;  %v550_v25 = vor.u32 %v586_v22, %v547_v23  ;;  %v553_v26 = vld [vmem:[%s214_s5 + $0x8] sm:$0xf]  ;;  %v589_v27 = vld [vmem:[%s214_s5 + $0x14] sm:$0xf0]  ;;  %v587_v28 = vld [vmem:[%s214_s5 + $0xc] sm:$0xf] }
  0x2a   : > { %375 = vmatpush.bf16.msra.mxu3 %v574_v20  ;;  %v554_v29 = vor.u32 %v589_v27, %v553_v26  ;;  %v555_v30 = vld [vmem:[%s214_s5 + $0x18] sm:$0xf0]  ;;  %v585_v32 = vld [vmem:[%s788_s0] sm:$0xff]  ;;  %vm323_vm0 = vcmask 261120   ;;  %s800_s8 = smov (!%p251_p11, %s538_s8), 15  ;;  %s594_s12 = sshll.u32 (%p730_p6), %s665_s14, 4 }
  0x2b   : > { %v558_v31 = vor.u32 %v587_v28, %v555_v30  ;;  %s253_s11 = scalar_lea.vmem %s790_s2, %s800_s8  ;;  %s411_s24 = scalar_lea.vmem (%p730_p6), %s791_s3, %s594_s12 }
  0x2c   : > { %334 = vmatpush.bf16.msra.mxu0 %v546_v24  ;;  %v268_v33 = vld [vmem:[%s253_s11] sm:$0xf] }
  0x2d   : > { %348 = vmatpush.bf16.msra.mxu1 %v550_v25  ;;  %362 = vmatpush.bf16.msra.mxu2 %v554_v29  ;;  %v270_v34 = vperm.slane %v268_v33, 0  ;;  %v271_v35 = vperm.slane %v268_v33, 1  ;;  %v272_v42 = vperm.slane %v268_v33, 2  ;;  %v273_v43 = vperm.slane %v268_v33, 3 }
  0x2e   : > { %376 = vmatpush.bf16.msra.mxu3 %v558_v31 }
  0x2f   : > { %575 = vmatmul.msk.bf16.vlgmr.msra.gmra.mxu0 %vm323_vm0, %v585_v32 }
  0x30   : > { %576 = vmatmul.msk.bf16.vlgmr.msra.gmra.mxu1 %vm323_vm0, %v585_v32  ;;  %577 = vmatmul.msk.bf16.vlgmr.msra.gmra.mxu2 %vm323_vm0, %v585_v32 }
  0x31   : > { %578 = vmatmul.msk.bf16.vlgmr.msra.gmra.mxu3 %vm323_vm0, %v585_v32 }
  0xac   : > { %v336_v36 = vpop.f32.mrf.mxu0 }
  0xad   : > { %v337_v37 = vadd.f32 %v336_v36, %v270_v34  ;;  %v350_v38 = vpop.f32.mrf.mxu1 }
  0xae   : > { %v351_v39 = vadd.f32 %v350_v38, %v271_v35 }
  0xaf   : > { %v383_v40 = vmax.f32 %v337_v37, 0.0 }
  0xb0   : > { %v384_v41 = vmax.f32 %v351_v39, 0.0 }
  0xb2   : > { %v391_v44 = vpack.c.bf16 %v384_v41, %v383_v40 }
  0xb3   : > { %v364_v45 = vpop.f32.mrf.mxu2 }
  0xb4   : > { %395 = vst [vmem:[%s757_s19] sm:$0xff] %v391_v44  ;;  %v365_v46 = vadd.f32 %v364_v45, %v272_v42  ;;  %v378_v47 = vpop.f32.mrf.mxu3  ;;  %v338_v48 = vpop.f32.mrf.mxu0 }
  0xb5   : > { %v379_v49 = vadd.f32 %v378_v47, %v273_v43  ;;  %v339_v50 = vadd.f32 %v338_v48, %v270_v34  ;;  %v352_v51 = vpop.f32.mrf.mxu1 }
  0xb6   : > { %v385_v52 = vmax.f32 %v365_v46, 0.0  ;;  %v353_v53 = vadd.f32 %v352_v51, %v271_v35 }
  0xb7   : > { %v386_v54 = vmax.f32 %v379_v49, 0.0  ;;  %v387_v55 = vmax.f32 %v339_v50, 0.0 }
  0xb8   : > { %v388_v56 = vmax.f32 %v353_v53, 0.0 }
  0xb9   : > { %v392_v57 = vpack.c.bf16 %v386_v54, %v385_v52 }
  0xba   : > { %v393_v58 = vpack.c.bf16 %v388_v56, %v387_v55 }
  0xbb   : > { %396 = vst [vmem:[%s757_s19 + $0x8] sm:$0xff] %v392_v57  ;;  %v366_v59 = vpop.f32.mrf.mxu2  ;;  %v424_v2 = vld [vmem:[%s757_s19] sm:$0xff] (%p730_p6) }
  0xbc   : > { %397 = vst [vmem:[%s757_s19 + $0x10] sm:$0xff] %v393_v58  ;;  %v367_v60 = vadd.f32 %v366_v59, %v272_v42  ;;  %v380_v61 = vpop.f32.mrf.mxu3 }
  0xbd   : > { %v381_v62 = vadd.f32 %v380_v61, %v273_v43  ;;  %425 = vst [vmem:[%s411_s24] sm:$0xff] (%p730_p6), %v424_v2 }
  0xbe   : > { %v389_v63 = vmax.f32 %v367_v60, 0.0 }
  0xbf   : > { %v390_v0 = vmax.f32 %v381_v62, 0.0  ;;  %405 = sbr.rel (!%p730_p6) target bundleno = 204 (0xcc), region = 59 }
  0xc1   : > { %v394_v1 = vpack.c.bf16 %v390_v0, %v389_v63 }
  0xc2   : > { %v426_v3 = vld [vmem:[%s757_s19 + $0x8] sm:$0xff] (%p730_p6) }
  0xc3   : > { %398 = vst [vmem:[%s757_s19 + $0x18] sm:$0xff] %v394_v1  ;;  %v428_v4 = vld [vmem:[%s757_s19 + $0x10] sm:$0xff] (%p730_p6) }
  0xc4   : > { %427 = vst [vmem:[%s411_s24 + $0x8] sm:$0xff] %v426_v3 }
  0xc5   : > { %429 = vst [vmem:[%s411_s24 + $0x40] sm:$0xff] %v428_v4 }
  0xca   : > { %v430_v5 = vld [vmem:[%s757_s19 + $0x18] sm:$0xff] }
  0xcb   : > { %431 = vst [vmem:[%s411_s24 + $0x48] sm:$0xff] %v430_v5 }
  0xcc PF: > { %s13_s16 = sadd.s32 1, %s673_s16   ;;  %s793_s12 = smov %s661_s13 }
  0xcd   : > { %p10_p12 = scmp.ge.s32.totalorder %s13_s16, 6   ;;  %s794_s13 = smov %s735_s22 }
  0xce   : > { %s795_s14 = smov %s669_s15  ;;  %s796_s15 = smov %s798_s17 }
  0xcf   :  { %12 = sbr.rel (!%p10_p12) target bundleno = 3 (0x3), region = 119 }

// kernel: bert_forward.21
= control target key start
LH: loop header
LB: loop body
LE: loop exit
PB: predicated region body
PF: predicated region fallthrough
CT: control target
= control target key end

     0   :  { %s172_s0 = inlined_call_operand.vmem [shape: bf16[16,32], index: 0, kind: input, shape index: {}]   ;;  %s173_s1 = inlined_call_operand.vmem [shape: bf16[32,128], index: 1, kind: input, shape index: {}]   ;;  %s174_s2 = inlined_call_operand.vmem [shape: f32[1,128], index: 2, kind: input, shape index: {}]   ;;  %s175_s3 = inlined_call_operand.hbm [shape: bf16[16,128], index: 3, kind: output, shape index: {}]  }
   0x1   :  { %v98_v0 = vld [vmem:[%s173_s1 + $0x8] sm:$0xff] }
   0x2   :  { %8 = vsyncpa [#allocation3], 0  ;;  %53 = vmatpush.bf16.msra.mxu0 %v98_v0  ;;  %v97_v1 = vld [vmem:[%s173_s1] sm:$0xff]  ;;  %vm43_vm0 = vcmask 261120   ;;  %s134_s20 = smov [#allocation2]   ;;  %s71_s24 = sshll.u32 %s175_s3, 4  ;;  %s72_s24 = int_to_ptr.hbm [resolvable:$true] %s71_s24 }
   0x3   :  { %v96_v2 = vld [vmem:[%s172_s0] sm:$0xff]  ;;  %s69_s21 = sshll.u32 %s134_s20, 4  ;;  %s135_s0 = smov 64   ;;  %s70_s21 = int_to_ptr.vmem [resolvable:$true] %s69_s21 }
   0x4   :  { %v107_v4 = vld [vmem:[%s174_s2] ss:$0 sm:$0xff]  ;;  %s136_s1 = smov 4  }
   0x6   :  { %54 = vmatpush.bf16.msra.mxu0 %v97_v1 }
   0x9   :  { %95 = vmatmul.msk.bf16.vlgmr.msra.gmra.mxu0 %vm43_vm0, %v96_v2 }
  0x86   :  { %v56_v3 = vpop.f32.mrf.mxu0 }
  0x87   :  { %v57_v6 = vadd.f32 %v107_v4, %v56_v3 }
  0x8e   :  { %v58_v5 = vpop.f32.mrf.mxu0 }
  0x8f   :  { %v59_v7 = vadd.f32 %v107_v4, %v58_v5 }
  0x91   :  { %v102_v8 = vpack.c.bf16 %v59_v7, %v57_v6 }
  0x93   :  { %103 = vst [vmem:[#allocation2] sm:$0xff] %v102_v8  }
  0x94   :  { %77 = dma.vmem_to_hbm [thread:$0]  %s70_s21, 128, %s72_s24, [#allocation3], %s135_s0, %s135_s0, %s136_s1  }
  0x95   :  { %132 = dma.done.wait [#allocation3], 128  }
  0x96   :  { %133 = vsyncadd [#allocation3], 4294967168 }
  0x97   :  { %82 = vsyncpa [#allocation3], 1 }

// kernel: bert_forward.15
= control target key start
LH: loop header
LB: loop body
LE: loop exit
PB: predicated region body
PF: predicated region fallthrough
CT: control target
= control target key end

     0   :  { %vm1377_vm0 = vcmask 261120   ;;  %vm1443_vm6 = vcmask 257024   ;;  %s2722_s1 = inlined_call_operand.vmem [shape: bf16[2048,32], index: 1, kind: input, shape index: {}]   ;;  %s2723_s2 = inlined_call_operand.vmem [shape: f32[1,32], index: 2, kind: input, shape index: {}]   ;;  %s2724_s0 = inlined_call_operand.vmem [shape: bf16[16,2048], index: 0, kind: input, shape index: {}]   ;;  %s2725_s3 = inlined_call_operand.vmem [shape: bf16[16,32], index: 3, kind: input, shape index: {}]   ;;  %s2726_s4 = inlined_call_operand.vmem [shape: f32[1,32], index: 4, kind: input, shape index: {}]   ;;  %s2727_s5 = inlined_call_operand.vmem [shape: f32[1,32], index: 5, kind: input, shape index: {}]   ;;  %s2728_s6 = inlined_call_operand.vmem [shape: bf16[16,32], index: 6, kind: output, shape index: {}]  }
   0x1   :  { %v2049_v0 = vld [vmem:[%s2722_s1 + $0x38] sm:$0xff]  ;;  %v2048_v4 = vld [vmem:[%s2722_s1 + $0x30] sm:$0xff]  ;;  %v2047_v8 = vld [vmem:[%s2722_s1 + $0x28] sm:$0xff] }
   0x2   :  { %v2057_v1 = vld [vmem:[%s2722_s1 + $0x78] sm:$0xff]  ;;  %1147 = vmatpush.bf16.msra.mxu0 %v2049_v0  ;;  %v2056_v5 = vld [vmem:[%s2722_s1 + $0x70] sm:$0xff]  ;;  %v2055_v9 = vld [vmem:[%s2722_s1 + $0x68] sm:$0xff] }
   0x3   :  { %v2065_v2 = vld [vmem:[%s2722_s1 + $0xb8] sm:$0xff]  ;;  %1161 = vmatpush.bf16.msra.mxu1 %v2057_v1  ;;  %v2064_v6 = vld [vmem:[%s2722_s1 + $0xb0] sm:$0xff]  ;;  %v2063_v10 = vld [vmem:[%s2722_s1 + $0xa8] sm:$0xff] }
   0x4   :  { %v2073_v3 = vld [vmem:[%s2722_s1 + $0xf8] sm:$0xff]  ;;  %1175 = vmatpush.bf16.msra.mxu2 %v2065_v2  ;;  %v2072_v7 = vld [vmem:[%s2722_s1 + $0xf0] sm:$0xff]  ;;  %v2071_v11 = vld [vmem:[%s2722_s1 + $0xe8] sm:$0xff] }
   0x5   :  { %1189 = vmatpush.bf16.msra.mxu3 %v2073_v3  ;;  %v2046_v12 = vld [vmem:[%s2722_s1 + $0x20] sm:$0xff]  ;;  %v2045_v16 = vld [vmem:[%s2722_s1 + $0x18] sm:$0xff]  ;;  %v2044_v20 = vld [vmem:[%s2722_s1 + $0x10] sm:$0xff] }
   0x6   :  { %1148 = vmatpush.bf16.msra.mxu0 %v2048_v4  ;;  %v2054_v13 = vld [vmem:[%s2722_s1 + $0x60] sm:$0xff]  ;;  %v2053_v17 = vld [vmem:[%s2722_s1 + $0x58] sm:$0xff]  ;;  %v2052_v21 = vld [vmem:[%s2722_s1 + $0x50] sm:$0xff] }
   0x7   :  { %1162 = vmatpush.bf16.msra.mxu1 %v2056_v5  ;;  %v2062_v14 = vld [vmem:[%s2722_s1 + $0xa0] sm:$0xff]  ;;  %v2061_v18 = vld [vmem:[%s2722_s1 + $0x98] sm:$0xff]  ;;  %v2060_v22 = vld [vmem:[%s2722_s1 + $0x90] sm:$0xff] }
   0x8   :  { %1176 = vmatpush.bf16.msra.mxu2 %v2064_v6  ;;  %v2070_v15 = vld [vmem:[%s2722_s1 + $0xe0] sm:$0xff]  ;;  %v2069_v19 = vld [vmem:[%s2722_s1 + $0xd8] sm:$0xff]  ;;  %v2068_v23 = vld [vmem:[%s2722_s1 + $0xd0] sm:$0xff] }
   0x9   :  { %1190 = vmatpush.bf16.msra.mxu3 %v2072_v7  ;;  %v2043_v24 = vld [vmem:[%s2722_s1 + $0x8] sm:$0xff]  ;;  %v2042_v28 = vld [vmem:[%s2722_s1] sm:$0xff]  ;;  %v2081_v32 = vld [vmem:[%s2722_s1 + $0x138] sm:$0xff] }
   0xa   :  { %1149 = vmatpush.bf16.msra.mxu0 %v2047_v8  ;;  %v2051_v25 = vld [vmem:[%s2722_s1 + $0x48] sm:$0xff]  ;;  %v2050_v29 = vld [vmem:[%s2722_s1 + $0x40] sm:$0xff]  ;;  %v2089_v33 = vld [vmem:[%s2722_s1 + $0x178] sm:$0xff] }
   0xb   :  { %1163 = vmatpush.bf16.msra.mxu1 %v2055_v9  ;;  %v2059_v26 = vld [vmem:[%s2722_s1 + $0x88] sm:$0xff]  ;;  %v2058_v30 = vld [vmem:[%s2722_s1 + $0x80] sm:$0xff]  ;;  %v2097_v42 = vld [vmem:[%s2722_s1 + $0x1b8] sm:$0xff] }
   0xc   :  { %1177 = vmatpush.bf16.msra.mxu2 %v2063_v10  ;;  %v2067_v27 = vld [vmem:[%s2722_s1 + $0xc8] sm:$0xff]  ;;  %v2066_v31 = vld [vmem:[%s2722_s1 + $0xc0] sm:$0xff]  ;;  %v2105_v43 = vld [vmem:[%s2722_s1 + $0x1f8] sm:$0xff] }
   0xd   :  { %1191 = vmatpush.bf16.msra.mxu3 %v2071_v11  ;;  %v1452_v34 = vld [vmem:[%s2724_s0] sm:$0xf]  ;;  %v1460_v36 = vld [vmem:[%s2724_s0 + $0x8] sm:$0xf]  ;;  %v2026_v38 = vld [vmem:[%s2724_s0 + $0x4] sm:$0xf] }
   0xe   :  { %1150 = vmatpush.bf16.msra.mxu0 %v2046_v12  ;;  %v2034_v35 = vld [vmem:[%s2724_s0 + $0x3c] sm:$0xf0]  ;;  %v2035_v37 = vld [vmem:[%s2724_s0 + $0x44] sm:$0xf0]  ;;  %v1454_v39 = vld [vmem:[%s2724_s0 + $0x40] sm:$0xf0] }
   0xf   :  { %1164 = vmatpush.bf16.msra.mxu1 %v2054_v13  ;;  %v2027_v40 = vld [vmem:[%s2724_s0 + $0xc] sm:$0xf]  ;;  %v1453_v44 = vor.u32 %v2034_v35, %v1452_v34  ;;  %v1461_v45 = vor.u32 %v2035_v37, %v1460_v36  ;;  %v1457_v46 = vor.u32 %v2026_v38, %v1454_v39  ;;  %v2080_v48 = vld [vmem:[%s2722_s1 + $0x130] sm:$0xff]  ;;  %v2078_v56 = vld [vmem:[%s2722_s1 + $0x120] sm:$0xff] }
  0x10   :  { %1178 = vmatpush.bf16.msra.mxu2 %v2062_v14  ;;  %v1462_v41 = vld [vmem:[%s2724_s0 + $0x48] sm:$0xf0]  ;;  %v2088_v49 = vld [vmem:[%s2722_s1 + $0x170] sm:$0xff]  ;;  %v2086_v57 = vld [vmem:[%s2722_s1 + $0x160] sm:$0xff] }
  0x11   :  { %1192 = vmatpush.bf16.msra.mxu3 %v2070_v15  ;;  %v1465_v47 = vor.u32 %v2027_v40, %v1462_v41  ;;  %v2096_v50 = vld [vmem:[%s2722_s1 + $0x1b0] sm:$0xff]  ;;  %v2079_v52 = vld [vmem:[%s2722_s1 + $0x128] sm:$0xff]  ;;  %v2094_v58 = vld [vmem:[%s2722_s1 + $0x1a0] sm:$0xff] }
  0x12   :  { %1151 = vmatpush.bf16.msra.mxu0 %v2045_v16  ;;  %v2104_v51 = vld [vmem:[%s2722_s1 + $0x1f0] sm:$0xff]  ;;  %v2087_v53 = vld [vmem:[%s2722_s1 + $0x168] sm:$0xff]  ;;  %v2102_v59 = vld [vmem:[%s2722_s1 + $0x1e0] sm:$0xff] }
  0x13   :  { %1165 = vmatpush.bf16.msra.mxu1 %v2053_v17  ;;  %v2095_v54 = vld [vmem:[%s2722_s1 + $0x1a8] sm:$0xff]  ;;  %v2077_v60 = vld [vmem:[%s2722_s1 + $0x118] sm:$0xff]  ;;  %v2076_v0 = vld [vmem:[%s2722_s1 + $0x110] sm:$0xff] }
  0x14   :  { %1179 = vmatpush.bf16.msra.mxu2 %v2061_v18  ;;  %v2103_v55 = vld [vmem:[%s2722_s1 + $0x1e8] sm:$0xff]  ;;  %v2085_v61 = vld [vmem:[%s2722_s1 + $0x158] sm:$0xff]  ;;  %v2084_v1 = vld [vmem:[%s2722_s1 + $0x150] sm:$0xff] }
  0x15   :  { %1193 = vmatpush.bf16.msra.mxu3 %v2069_v19  ;;  %v2093_v62 = vld [vmem:[%s2722_s1 + $0x198] sm:$0xff]  ;;  %v2092_v2 = vld [vmem:[%s2722_s1 + $0x190] sm:$0xff]  ;;  %v2075_v4 = vld [vmem:[%s2722_s1 + $0x108] sm:$0xff] }
  0x16   :  { %1152 = vmatpush.bf16.msra.mxu0 %v2044_v20  ;;  %v2101_v63 = vld [vmem:[%s2722_s1 + $0x1d8] sm:$0xff]  ;;  %v2100_v3 = vld [vmem:[%s2722_s1 + $0x1d0] sm:$0xff]  ;;  %v2083_v5 = vld [vmem:[%s2722_s1 + $0x148] sm:$0xff] }
  0x17   :  { %1166 = vmatpush.bf16.msra.mxu1 %v2052_v21  ;;  %v2091_v6 = vld [vmem:[%s2722_s1 + $0x188] sm:$0xff]  ;;  %v2074_v8 = vld [vmem:[%s2722_s1 + $0x100] sm:$0xff]  ;;  %v2113_v12 = vld [vmem:[%s2722_s1 + $0x238] sm:$0xff] }
  0x18   :  { %1180 = vmatpush.bf16.msra.mxu2 %v2060_v22  ;;  %v2099_v7 = vld [vmem:[%s2722_s1 + $0x1c8] sm:$0xff]  ;;  %v2082_v9 = vld [vmem:[%s2722_s1 + $0x140] sm:$0xff]  ;;  %v2121_v13 = vld [vmem:[%s2722_s1 + $0x278] sm:$0xff] }
  0x19   :  { %1194 = vmatpush.bf16.msra.mxu3 %v2068_v23  ;;  %v2090_v10 = vld [vmem:[%s2722_s1 + $0x180] sm:$0xff]  ;;  %v1468_v14 = vld [vmem:[%s2724_s0 + $0x10] sm:$0xf]  ;;  %v1476_v16 = vld [vmem:[%s2724_s0 + $0x18] sm:$0xf] }
  0x1a   :  { %1153 = vmatpush.bf16.msra.mxu0 %v2043_v24  ;;  %v2098_v11 = vld [vmem:[%s2722_s1 + $0x1c0] sm:$0xff]  ;;  %v2036_v15 = vld [vmem:[%s2724_s0 + $0x4c] sm:$0xf0]  ;;  %v2037_v17 = vld [vmem:[%s2724_s0 + $0x54] sm:$0xf0] }
  0x1b   :  { %1167 = vmatpush.bf16.msra.mxu1 %v2051_v25  ;;  %v2028_v18 = vld [vmem:[%s2724_s0 + $0x14] sm:$0xf]  ;;  %v2029_v20 = vld [vmem:[%s2724_s0 + $0x1c] sm:$0xf]  ;;  %v1469_v24 = vor.u32 %v2036_v15, %v1468_v14  ;;  %v1477_v25 = vor.u32 %v2037_v17, %v1476_v16  ;;  %v2127_v34 = vld [vmem:[%s2722_s1 + $0x2a8] sm:$0xff] }
  0x1c   :  { %1181 = vmatpush.bf16.msra.mxu2 %v2059_v26  ;;  %v1470_v19 = vld [vmem:[%s2724_s0 + $0x50] sm:$0xf0]  ;;  %v1478_v21 = vld [vmem:[%s2724_s0 + $0x58] sm:$0xf0]  ;;  %v2135_v35 = vld [vmem:[%s2722_s1 + $0x2e8] sm:$0xff] }
  0x1d   :  { %1195 = vmatpush.bf16.msra.mxu3 %v2067_v27  ;;  %v2129_v22 = vld [vmem:[%s2722_s1 + $0x2b8] sm:$0xff]  ;;  %v1473_v26 = vor.u32 %v2028_v18, %v1470_v19  ;;  %v1481_v27 = vor.u32 %v2029_v20, %v1478_v21  ;;  %v2110_v36 = vld [vmem:[%s2722_s1 + $0x220] sm:$0xff]  ;;  %v2159_v14 = vld [vmem:[%s2722_s1 + $0x3a8] sm:$0xff] }
  0x1e   :  { %1154 = vmatpush.bf16.msra.mxu0 %v2042_v28  ;;  %v2137_v23 = vld [vmem:[%s2722_s1 + $0x2f8] sm:$0xff]  ;;  %v2112_v28 = vld [vmem:[%s2722_s1 + $0x230] sm:$0xff]  ;;  %v2118_v37 = vld [vmem:[%s2722_s1 + $0x260] sm:$0xff] }
  0x1f   :  { %1168 = vmatpush.bf16.msra.mxu1 %v2050_v29  ;;  %v2120_v29 = vld [vmem:[%s2722_s1 + $0x270] sm:$0xff]  ;;  %v2126_v38 = vld [vmem:[%s2722_s1 + $0x2a0] sm:$0xff]  ;;  %v2109_v40 = vld [vmem:[%s2722_s1 + $0x218] sm:$0xff] }
  0x20   :  { %1182 = vmatpush.bf16.msra.mxu2 %v2058_v30  ;;  %v2128_v30 = vld [vmem:[%s2722_s1 + $0x2b0] sm:$0xff]  ;;  %v2134_v39 = vld [vmem:[%s2722_s1 + $0x2e0] sm:$0xff]  ;;  %v2117_v41 = vld [vmem:[%s2722_s1 + $0x258] sm:$0xff] }
  0x21   :  { %1196 = vmatpush.bf16.msra.mxu3 %v2066_v31  ;;  %1155 = vmatmul.bf16.vlgmr.msra.gmra.mxu0 %v1453_v44  ;;  %v2136_v31 = vld [vmem:[%s2722_s1 + $0x2f0] sm:$0xff]  ;;  %v2167_v15 = vld [vmem:[%s2722_s1 + $0x3e8] sm:$0xff]  ;;  %v2142_v16 = vld [vmem:[%s2722_s1 + $0x320] sm:$0xff] }
  0x22   :  { %1203 = vmatpush.bf16.msrb.mxu0 %v2081_v32  ;;  %1169 = vmatmul.bf16.vlgmr.msra.gmra.mxu1 %v1457_v46  ;;  %v2111_v32 = vld [vmem:[%s2722_s1 + $0x228] sm:$0xff]  ;;  %v2108_v44 = vld [vmem:[%s2722_s1 + $0x210] sm:$0xff]  ;;  %v2150_v17 = vld [vmem:[%s2722_s1 + $0x360] sm:$0xff] }
  0x23   :  { %1217 = vmatpush.bf16.msrb.mxu1 %v2089_v33  ;;  %1183 = vmatmul.bf16.vlgmr.msra.gmra.mxu2 %v1461_v45  ;;  %v2119_v33 = vld [vmem:[%s2722_s1 + $0x268] sm:$0xff]  ;;  %v2116_v45 = vld [vmem:[%s2722_s1 + $0x250] sm:$0xff]  ;;  %v2158_v18 = vld [vmem:[%s2722_s1 + $0x3a0] sm:$0xff] }
  0x24   :  { %1231 = vmatpush.bf16.msrb.mxu2 %v2097_v42  ;;  %1197 = vmatmul.bf16.vlgmr.msra.gmra.mxu3 %v1465_v47  ;;  %v2125_v42 = vld [vmem:[%s2722_s1 + $0x298] sm:$0xff]  ;;  %v2124_v46 = vld [vmem:[%s2722_s1 + $0x290] sm:$0xff]  ;;  %v2166_v19 = vld [vmem:[%s2722_s1 + $0x3e0] sm:$0xff] }
  0x25   :  { %1245 = vmatpush.bf16.msrb.mxu3 %v2105_v43  ;;  %v2133_v43 = vld [vmem:[%s2722_s1 + $0x2d8] sm:$0xff]  ;;  %v2132_v47 = vld [vmem:[%s2722_s1 + $0x2d0] sm:$0xff] }
  0x26   :  { %1204 = vmatpush.bf16.msrb.mxu0 %v2080_v48  ;;  %v2107_v48 = vld [vmem:[%s2722_s1 + $0x208] sm:$0xff]  ;;  %v2141_v20 = vld [vmem:[%s2722_s1 + $0x318] sm:$0xff] }
  0x27   :  { %1218 = vmatpush.bf16.msrb.mxu1 %v2088_v49  ;;  %v2115_v49 = vld [vmem:[%s2722_s1 + $0x248] sm:$0xff]  ;;  %v2149_v21 = vld [vmem:[%s2722_s1 + $0x358] sm:$0xff] }
  0x28   :  { %1232 = vmatpush.bf16.msrb.mxu2 %v2096_v50  ;;  %v2123_v50 = vld [vmem:[%s2722_s1 + $0x288] sm:$0xff] }
  0x29   :  { %1246 = vmatpush.bf16.msrb.mxu3 %v2104_v51  ;;  %v2131_v51 = vld [vmem:[%s2722_s1 + $0x2c8] sm:$0xff] }
  0x2a   :  { %1205 = vmatpush.bf16.msrb.mxu0 %v2079_v52  ;;  %v2106_v52 = vld [vmem:[%s2722_s1 + $0x200] sm:$0xff] }
  0x2b   :  { %1219 = vmatpush.bf16.msrb.mxu1 %v2087_v53  ;;  %v2114_v53 = vld [vmem:[%s2722_s1 + $0x240] sm:$0xff] }
  0x2c   :  { %1233 = vmatpush.bf16.msrb.mxu2 %v2095_v54  ;;  %v2122_v54 = vld [vmem:[%s2722_s1 + $0x280] sm:$0xff] }
  0x2d   :  { %1247 = vmatpush.bf16.msrb.mxu3 %v2103_v55  ;;  %v2130_v55 = vld [vmem:[%s2722_s1 + $0x2c0] sm:$0xff] }
  0x2e   :  { %1206 = vmatpush.bf16.msrb.mxu0 %v2078_v56  ;;  %v2145_v56 = vld [vmem:[%s2722_s1 + $0x338] sm:$0xff] }
  0x2f   :  { %1220 = vmatpush.bf16.msrb.mxu1 %v2086_v57  ;;  %v2153_v57 = vld [vmem:[%s2722_s1 + $0x378] sm:$0xff] }
  0x30   :  { %1234 = vmatpush.bf16.msrb.mxu2 %v2094_v58  ;;  %v1484_v58 = vld [vmem:[%s2724_s0 + $0x20] sm:$0xf] }
  0x31   :  { %1248 = vmatpush.bf16.msrb.mxu3 %v2102_v59  ;;  %v2038_v59 = vld [vmem:[%s2724_s0 + $0x5c] sm:$0xf0] }
  0x32   :  { %1207 = vmatpush.bf16.msrb.mxu0 %v2077_v60  ;;  %v1492_v60 = vld [vmem:[%s2724_s0 + $0x28] sm:$0xf] }
  0x33   :  { %1221 = vmatpush.bf16.msrb.mxu1 %v2085_v61  ;;  %v2039_v61 = vld [vmem:[%s2724_s0 + $0x64] sm:$0xf0] }
  0x34   :  { %1235 = vmatpush.bf16.msrb.mxu2 %v2093_v62  ;;  %v2030_v62 = vld [vmem:[%s2724_s0 + $0x24] sm:$0xf] }
  0x35   :  { %1249 = vmatpush.bf16.msrb.mxu3 %v2101_v63  ;;  %v1486_v63 = vld [vmem:[%s2724_s0 + $0x60] sm:$0xf0] }
  0x36   :  { %1208 = vmatpush.bf16.msrb.mxu0 %v2076_v0  ;;  %v2031_v0 = vld [vmem:[%s2724_s0 + $0x2c] sm:$0xf] }
  0x37   :  { %1222 = vmatpush.bf16.msrb.mxu1 %v2084_v1  ;;  %v1494_v1 = vld [vmem:[%s2724_s0 + $0x68] sm:$0xf0] }
  0x38   :  { %1236 = vmatpush.bf16.msrb.mxu2 %v2092_v2  ;;  %v2161_v2 = vld [vmem:[%s2722_s1 + $0x3b8] sm:$0xff] }
  0x39   :  { %1250 = vmatpush.bf16.msrb.mxu3 %v2100_v3  ;;  %v2169_v3 = vld [vmem:[%s2722_s1 + $0x3f8] sm:$0xff] }
  0x3a   :  { %1209 = vmatpush.bf16.msrb.mxu0 %v2075_v4  ;;  %v1485_v4 = vor.u32 %v2038_v59, %v1484_v58 }
  0x3b   :  { %1223 = vmatpush.bf16.msrb.mxu1 %v2083_v5  ;;  %v1493_v5 = vor.u32 %v2039_v61, %v1492_v60 }
  0x3c   :  { %1237 = vmatpush.bf16.msrb.mxu2 %v2091_v6  ;;  %v1489_v6 = vor.u32 %v2030_v62, %v1486_v63 }
  0x3d   :  { %1251 = vmatpush.bf16.msrb.mxu3 %v2099_v7  ;;  %v1497_v7 = vor.u32 %v2031_v0, %v1494_v1 }
  0x3e   :  { %1210 = vmatpush.bf16.msrb.mxu0 %v2074_v8  ;;  %v2144_v8 = vld [vmem:[%s2722_s1 + $0x330] sm:$0xff] }
  0x3f   :  { %1224 = vmatpush.bf16.msrb.mxu1 %v2082_v9  ;;  %v2152_v9 = vld [vmem:[%s2722_s1 + $0x370] sm:$0xff] }
  0x40   :  { %1238 = vmatpush.bf16.msrb.mxu2 %v2090_v10  ;;  %v2160_v10 = vld [vmem:[%s2722_s1 + $0x3b0] sm:$0xff] }
  0x41   :  { %1252 = vmatpush.bf16.msrb.mxu3 %v2098_v11  ;;  %1211 = vmatmul.bf16.vlgmr.msrb.gmra.mxu0 %v1469_v24  ;;  %v2168_v11 = vld [vmem:[%s2722_s1 + $0x3f0] sm:$0xff] }
  0x42   :  { %1259 = vmatpush.bf16.msra.mxu0 %v2113_v12  ;;  %1225 = vmatmul.bf16.vlgmr.msrb.gmra.mxu1 %v1473_v26  ;;  %v2143_v12 = vld [vmem:[%s2722_s1 + $0x328] sm:$0xff]  ;;  %v2140_v24 = vld [vmem:[%s2722_s1 + $0x310] sm:$0xff] }
  0x43   :  { %1273 = vmatpush.bf16.msra.mxu1 %v2121_v13  ;;  %1239 = vmatmul.bf16.vlgmr.msrb.gmra.mxu2 %v1477_v25  ;;  %v2151_v13 = vld [vmem:[%s2722_s1 + $0x368] sm:$0xff]  ;;  %v2148_v25 = vld [vmem:[%s2722_s1 + $0x350] sm:$0xff] }
  0x44   :  { %1287 = vmatpush.bf16.msra.mxu2 %v2129_v22  ;;  %1253 = vmatmul.bf16.vlgmr.msrb.gmra.mxu3 %v1481_v27  ;;  %v2157_v22 = vld [vmem:[%s2722_s1 + $0x398] sm:$0xff]  ;;  %v2156_v26 = vld [vmem:[%s2722_s1 + $0x390] sm:$0xff] }
  0x45   :  { %1301 = vmatpush.bf16.msra.mxu3 %v2137_v23  ;;  %v2165_v23 = vld [vmem:[%s2722_s1 + $0x3d8] sm:$0xff]  ;;  %v2164_v27 = vld [vmem:[%s2722_s1 + $0x3d0] sm:$0xff] }
  0x46   :  { %1260 = vmatpush.bf16.msra.mxu0 %v2112_v28  ;;  %v2139_v28 = vld [vmem:[%s2722_s1 + $0x308] sm:$0xff] }
  0x47   :  { %1274 = vmatpush.bf16.msra.mxu1 %v2120_v29  ;;  %v2147_v29 = vld [vmem:[%s2722_s1 + $0x348] sm:$0xff] }
  0x48   :  { %1288 = vmatpush.bf16.msra.mxu2 %v2128_v30  ;;  %v2155_v30 = vld [vmem:[%s2722_s1 + $0x388] sm:$0xff] }
  0x49   :  { %1302 = vmatpush.bf16.msra.mxu3 %v2136_v31  ;;  %v2163_v31 = vld [vmem:[%s2722_s1 + $0x3c8] sm:$0xff] }
  0x4a   :  { %1261 = vmatpush.bf16.msra.mxu0 %v2111_v32  ;;  %v2138_v32 = vld [vmem:[%s2722_s1 + $0x300] sm:$0xff] }
  0x4b   :  { %1275 = vmatpush.bf16.msra.mxu1 %v2119_v33  ;;  %v2146_v33 = vld [vmem:[%s2722_s1 + $0x340] sm:$0xff] }
  0x4c   :  { %1289 = vmatpush.bf16.msra.mxu2 %v2127_v34  ;;  %v2154_v34 = vld [vmem:[%s2722_s1 + $0x380] sm:$0xff] }
  0x4d   :  { %1303 = vmatpush.bf16.msra.mxu3 %v2135_v35  ;;  %v2162_v35 = vld [vmem:[%s2722_s1 + $0x3c0] sm:$0xff] }
  0x4e   :  { %1262 = vmatpush.bf16.msra.mxu0 %v2110_v36  ;;  %v1500_v36 = vld [vmem:[%s2724_s0 + $0x30] sm:$0xf] }
  0x4f   :  { %1276 = vmatpush.bf16.msra.mxu1 %v2118_v37  ;;  %v2040_v37 = vld [vmem:[%s2724_s0 + $0x6c] sm:$0xf0] }
  0x50   :  { %1290 = vmatpush.bf16.msra.mxu2 %v2126_v38  ;;  %v2032_v38 = vld [vmem:[%s2724_s0 + $0x34] sm:$0xf] }
  0x51   :  { %1304 = vmatpush.bf16.msra.mxu3 %v2134_v39  ;;  %v1502_v39 = vld [vmem:[%s2724_s0 + $0x70] sm:$0xf0] }
  0x52   :  { %1263 = vmatpush.bf16.msra.mxu0 %v2109_v40  ;;  %v1508_v40 = vld [vmem:[%s2724_s0 + $0x38] sm:$0xf] }
  0x53   :  { %1277 = vmatpush.bf16.msra.mxu1 %v2117_v41  ;;  %v2041_v41 = vld [vmem:[%s2724_s0 + $0x74] sm:$0xf0] }
  0x54   :  { %1291 = vmatpush.bf16.msra.mxu2 %v2125_v42  ;;  %v2033_v42 = vld [vmem:[%s2724_s0 + $0x3c] sm:$0xf] }
  0x55   :  { %1305 = vmatpush.bf16.msra.mxu3 %v2133_v43  ;;  %v1510_v43 = vld [vmem:[%s2724_s0 + $0x78] sm:$0xf0] }
  0x56   :  { %1264 = vmatpush.bf16.msra.mxu0 %v2108_v44  ;;  %v1501_v44 = vor.u32 %v2040_v37, %v1500_v36 }
  0x57   :  { %1278 = vmatpush.bf16.msra.mxu1 %v2116_v45  ;;  %v1505_v45 = vor.u32 %v2032_v38, %v1502_v39 }
  0x58   :  { %1292 = vmatpush.bf16.msra.mxu2 %v2124_v46  ;;  %v1509_v46 = vor.u32 %v2041_v41, %v1508_v40 }
  0x59   :  { %1306 = vmatpush.bf16.msra.mxu3 %v2132_v47  ;;  %v1513_v47 = vor.u32 %v2033_v42, %v1510_v43 }
  0x5a   :  { %1265 = vmatpush.bf16.msra.mxu0 %v2107_v48 }
  0x5b   :  { %1279 = vmatpush.bf16.msra.mxu1 %v2115_v49 }
  0x5c   :  { %1293 = vmatpush.bf16.msra.mxu2 %v2123_v50 }
  0x5d   :  { %1307 = vmatpush.bf16.msra.mxu3 %v2131_v51 }
  0x5e   :  { %1266 = vmatpush.bf16.msra.mxu0 %v2106_v52 }
  0x5f   :  { %1280 = vmatpush.bf16.msra.mxu1 %v2114_v53  ;;  %v2175_v53 = vld [vmem:[%s2723_s2] ss:$0 sm:$0xff] }
  0x60   :  { %1294 = vmatpush.bf16.msra.mxu2 %v2122_v54 }
  0x61   :  { %1308 = vmatpush.bf16.msra.mxu3 %v2130_v55  ;;  %1267 = vmatmul.bf16.vlgmr.msra.gmra.mxu0 %v1485_v4 }
  0x62   :  { %1315 = vmatpush.bf16.msrb.mxu0 %v2145_v56  ;;  %1281 = vmatmul.bf16.vlgmr.msra.gmra.mxu1 %v1489_v6 }
  0x63   :  { %1329 = vmatpush.bf16.msrb.mxu1 %v2153_v57  ;;  %1295 = vmatmul.bf16.vlgmr.msra.gmra.mxu2 %v1493_v5 }
  0x64   :  { %1343 = vmatpush.bf16.msrb.mxu2 %v2161_v2  ;;  %1309 = vmatmul.bf16.vlgmr.msra.gmra.mxu3 %v1497_v7 }
  0x65   :  { %1357 = vmatpush.bf16.msrb.mxu3 %v2169_v3 }
  0x66   :  { %1316 = vmatpush.bf16.msrb.mxu0 %v2144_v8 }
  0x67   :  { %1330 = vmatpush.bf16.msrb.mxu1 %v2152_v9 }
  0x68   :  { %1344 = vmatpush.bf16.msrb.mxu2 %v2160_v10 }
  0x69   :  { %1358 = vmatpush.bf16.msrb.mxu3 %v2168_v11 }
  0x6a   :  { %1317 = vmatpush.bf16.msrb.mxu0 %v2143_v12 }
  0x6b   :  { %1331 = vmatpush.bf16.msrb.mxu1 %v2151_v13 }
  0x6c   :  { %1345 = vmatpush.bf16.msrb.mxu2 %v2159_v14 }
  0x6d   :  { %1359 = vmatpush.bf16.msrb.mxu3 %v2167_v15 }
  0x6e   :  { %1318 = vmatpush.bf16.msrb.mxu0 %v2142_v16 }
  0x6f   :  { %1332 = vmatpush.bf16.msrb.mxu1 %v2150_v17 }
  0x70   :  { %1346 = vmatpush.bf16.msrb.mxu2 %v2158_v18 }
  0x71   :  { %1360 = vmatpush.bf16.msrb.mxu3 %v2166_v19 }
  0x72   :  { %1319 = vmatpush.bf16.msrb.mxu0 %v2141_v20 }
  0x73   :  { %1333 = vmatpush.bf16.msrb.mxu1 %v2149_v21 }
  0x74   :  { %1347 = vmatpush.bf16.msrb.mxu2 %v2157_v22 }
  0x75   :  { %1361 = vmatpush.bf16.msrb.mxu3 %v2165_v23 }
  0x76   :  { %1320 = vmatpush.bf16.msrb.mxu0 %v2140_v24 }
  0x77   :  { %1334 = vmatpush.bf16.msrb.mxu1 %v2148_v25 }
  0x78   :  { %1348 = vmatpush.bf16.msrb.mxu2 %v2156_v26 }
  0x79   :  { %1362 = vmatpush.bf16.msrb.mxu3 %v2164_v27 }
  0x7a   :  { %1321 = vmatpush.bf16.msrb.mxu0 %v2139_v28 }
  0x7b   :  { %1335 = vmatpush.bf16.msrb.mxu1 %v2147_v29 }
  0x7c   :  { %1349 = vmatpush.bf16.msrb.mxu2 %v2155_v30 }
  0x7d   :  { %1363 = vmatpush.bf16.msrb.mxu3 %v2163_v31 }
  0x7e   :  { %1322 = vmatpush.bf16.msrb.mxu0 %v2138_v32 }
  0x7f   :  { %1336 = vmatpush.bf16.msrb.mxu1 %v2146_v33 }
  0x80   :  { %1350 = vmatpush.bf16.msrb.mxu2 %v2154_v34 }
  0x81   :  { %1364 = vmatpush.bf16.msrb.mxu3 %v2162_v35  ;;  %1323 = vmatmul.bf16.vlgmr.msrb.gmra.mxu0 %v1501_v44  ;;  %v2171_v35 = vld [vmem:[%s2725_s3] sm:$0xff]  }
  0x82   :  { %1337 = vmatmul.bf16.vlgmr.msrb.gmra.mxu1 %v1505_v45  ;;  %v2172_v42 = vunpack.c.l.bf16 %v2171_v35 }
  0x83   :  { %1351 = vmatmul.bf16.vlgmr.msrb.gmra.mxu2 %v1509_v46 }
  0x84   :  { %1365 = vmatmul.bf16.vlgmr.msrb.gmra.mxu3 %v1513_v47 }
  0x9e   :  { %v1156_v48 = vpop.f32.mrf.mxu0 }
  0x9f   :  { %v1170_v49 = vpop.f32.mrf.mxu1  ;;  %v1157_v55 = vadd.f32 %v2175_v53, %v1156_v48 }
  0xa1   :  { %v1171_v58 = vadd.f32 %v1170_v49, %v1157_v55 }
  0xa6   :  { %v1184_v50 = vpop.f32.mrf.mxu2  ;;  %v1158_v52 = vpop.f32.mrf.mxu0 }
  0xa7   :  { %v1198_v51 = vpop.f32.mrf.mxu3  ;;  %v1172_v54 = vpop.f32.mrf.mxu1  ;;  %v1185_v61 = vadd.f32 %v1184_v50, %v1171_v58  ;;  %v1159_v62 = vadd.f32 %v2175_v53, %v1158_v52 }
  0xa9   :  { %v1199_v1 = vadd.f32 %v1198_v51, %v1185_v61  ;;  %v1173_v2 = vadd.f32 %v1172_v54, %v1159_v62  ;;  %v2173_v51 = vunpack.c.h.bf16 %v2171_v35 }
  0xae   :  { %v1186_v56 = vpop.f32.mrf.mxu2 }
  0xaf   :  { %v1200_v57 = vpop.f32.mrf.mxu3  ;;  %v1187_v6 = vadd.f32 %v1186_v56, %v1173_v2  ;;  %v2184_v56 = vmov 32.0  }
  0xb0   :  { %2178 = vrcp.f32 %v2184_v56 }
  0xb1   :  { %v1201_v10 = vadd.f32 %v1200_v57, %v1187_v6 }
  0xb6   :  { %v2179_v57 = vpop.eup %2178 }
  0xb7   :  { %v1385_v58 = vmul.f32 32.0, %v2179_v57  ;;  %vm1389_vm1 = vweird.f32 %v2179_v57 }
  0xbe   :  { %v1212_v59 = vpop.f32.mrf.mxu0 }
  0xbf   :  { %v1226_v60 = vpop.f32.mrf.mxu1  ;;  %v1213_v4 = vadd.f32 %v1212_v59, %v1199_v1  ;;  %v1386_v59 = vsub.f32 1.0, %v1385_v58 }
  0xc1   :  { %v1227_v7 = vadd.f32 %v1226_v60, %v1213_v4  ;;  %v1387_v60 = vmul.f32 %v2179_v57, %v1386_v59 }
  0xc3   :  { %v1388_v61 = vadd.f32 %v2179_v57, %v1387_v60 }
  0xc5   :  { %v1390_v62 = vsel %vm1389_vm1, %v2179_v57, %v1388_v61 }
  0xc6   :  { %v1240_v63 = vpop.f32.mrf.mxu2  ;;  %v1214_v3 = vpop.f32.mrf.mxu0 }
  0xc7   :  { %v1254_v0 = vpop.f32.mrf.mxu3  ;;  %v1228_v5 = vpop.f32.mrf.mxu1  ;;  %v1241_v12 = vadd.f32 %v1240_v63, %v1227_v7  ;;  %v1215_v14 = vadd.f32 %v1214_v3, %v1201_v10 }
  0xc9   :  { %v1255_v15 = vadd.f32 %v1254_v0, %v1241_v12  ;;  %v1229_v18 = vadd.f32 %v1228_v5, %v1215_v14 }
  0xce   :  { %v1242_v8 = vpop.f32.mrf.mxu2 }
  0xcf   :  { %v1256_v9 = vpop.f32.mrf.mxu3  ;;  %v1243_v20 = vadd.f32 %v1242_v8, %v1229_v18 }
  0xd1   :  { %v1257_v24 = vadd.f32 %v1256_v9, %v1243_v20 }
  0xde   :  { %v1268_v11 = vpop.f32.mrf.mxu0 }
  0xdf   :  { %v1282_v13 = vpop.f32.mrf.mxu1  ;;  %v1269_v19 = vadd.f32 %v1268_v11, %v1255_v15 }
  0xe1   :  { %v1283_v22 = vadd.f32 %v1282_v13, %v1269_v19 }
  0xe6   :  { %v1296_v16 = vpop.f32.mrf.mxu2  ;;  %v1270_v21 = vpop.f32.mrf.mxu0 }
  0xe7   :  { %v1310_v17 = vpop.f32.mrf.mxu3  ;;  %v1284_v23 = vpop.f32.mrf.mxu1  ;;  %v1297_v25 = vadd.f32 %v1296_v16, %v1283_v22  ;;  %v1271_v26 = vadd.f32 %v1270_v21, %v1257_v24 }
  0xe9   :  { %v1311_v29 = vadd.f32 %v1310_v17, %v1297_v25  ;;  %v1285_v31 = vadd.f32 %v1284_v23, %v1271_v26  ;;  %v2176_v23 = vld [vmem:[%s2726_s4] ss:$0 sm:$0xff] }
  0xea   :  { %v2177_v26 = vld [vmem:[%s2727_s5] ss:$0 sm:$0xff] }
  0xee   :  { %v1298_v27 = vpop.f32.mrf.mxu2 }
  0xef   :  { %v1312_v28 = vpop.f32.mrf.mxu3  ;;  %v1299_v34 = vadd.f32 %v1298_v27, %v1285_v31 }
  0xf1   :  { %v1313_v39 = vadd.f32 %v1312_v28, %v1299_v34 }
  0xfe   :  { %v1324_v30 = vpop.f32.mrf.mxu0 }
  0xff   :  { %v1325_v32 = vadd.f32 %v1324_v30, %v1311_v29  ;;  %v1338_v33 = vpop.f32.mrf.mxu1 }
 0x101   :  { %v1339_v36 = vadd.f32 %v1338_v33, %v1325_v32 }
 0x106   :  { %v1352_v37 = vpop.f32.mrf.mxu2  ;;  %v1326_v41 = vpop.f32.mrf.mxu0 }
 0x107   :  { %v1366_v38 = vpop.f32.mrf.mxu3  ;;  %v1353_v40 = vadd.f32 %v1352_v37, %v1339_v36  ;;  %v1327_v44 = vadd.f32 %v1326_v41, %v1313_v39  ;;  %v1340_v46 = vpop.f32.mrf.mxu1 }
 0x109   :  { %v1367_v43 = vadd.f32 %v1366_v38, %v1353_v40  ;;  %v1341_v47 = vadd.f32 %v1340_v46, %v1327_v44 }
 0x10b   :  { %v1375_v45 = vadd.f32 %v2172_v42, %v1367_v43 }
 0x10d   :  { %v1378_v48 = vsel %vm1377_vm0, %v1375_v45, 0.0 }
 0x10e   :  { %v1354_v49 = vpop.f32.mrf.mxu2  ;;  %1379 = vadd.xlane.f32.xlu0 %v1378_v48 }
 0x10f   :  { %v1355_v50 = vadd.f32 %v1354_v49, %v1341_v47  ;;  %v1368_v52 = vpop.f32.mrf.mxu3 }
 0x111   :  { %v1369_v53 = vadd.f32 %v1368_v52, %v1355_v50 }
 0x113   :  { %v1376_v54 = vadd.f32 %v2173_v51, %v1369_v53 }
 0x115   :  { %v1381_v55 = vsel %vm1377_vm0, %v1376_v54, 0.0 }
 0x116   :  { %1382 = vadd.xlane.f32.xlu0 %v1381_v55 }
 0x181   :  { %v1380_v63 = vpop.xlane.xlu0 %1379 }
 0x182   :  { %v1391_v0 = vmul.f32 %v1390_v62, %v1380_v63 }
 0x184   :  { %v1393_v1 = vsub.f32 %v1375_v45, %v1391_v0 }
 0x186   :  { %v1395_v2 = vmul.f32 %v1393_v1, %v1393_v1 }
 0x188   :  { %v1397_v3 = vsel %vm1377_vm0, %v1395_v2, 0.0 }
 0x189   :  { %1398 = vadd.xlane.f32.xlu1 %v1397_v3  ;;  %v1383_v4 = vpop.xlane.xlu0 %1382 }
 0x18a   :  { %v1392_v5 = vmul.f32 %v1390_v62, %v1383_v4 }
 0x18c   :  { %v1394_v6 = vsub.f32 %v1376_v54, %v1392_v5 }
 0x18e   :  { %v1396_v7 = vmul.f32 %v1394_v6, %v1394_v6 }
 0x190   :  { %v1400_v8 = vsel %vm1377_vm0, %v1396_v7, 0.0 }
 0x191   :  { %1401 = vadd.xlane.f32.xlu1 %v1400_v8 }
 0x1fc   :  { %v1399_v9 = vpop.xlane.xlu1 %1398 }
 0x1fd   :  { %v1403_v10 = vmul.f32 %v1399_v9, %v1390_v62 }
 0x1ff   :  { %v1405_v11 = vadd.f32 1e-05, %v1403_v10 }
 0x201   :  { %2180 = vrsqrt.f32 %v1405_v11  ;;  %vm1413_vm3 = vweird.f32 %v1405_v11 }
 0x204   :  { %v1402_v12 = vpop.xlane.xlu1 %1401 }
 0x205   :  { %v1404_v13 = vmul.f32 %v1402_v12, %v1390_v62 }
 0x207   :  { %v2181_v14 = vpop.eup %2180  ;;  %v1406_v15 = vadd.f32 1e-05, %v1404_v13 }
 0x208   :  { %v1408_v16 = vmul.f32 %v2181_v14, %v1405_v11  ;;  %vm1414_vm2 = vweird.f32 %v2181_v14 }
 0x209   :  { %2182 = vrsqrt.f32 %v1406_v15  ;;  %vm1415_vm4 = vmor %vm1413_vm3, %vm1414_vm2  ;;  %vm1423_vm7 = vweird.f32 %v1406_v15 }
 0x20a   :  { %v1409_v17 = vmul.f32 %v2181_v14, %v1408_v16 }
 0x20c   :  { %v1410_v18 = vmul.f32 0.5, %v1409_v17 }
 0x20e   :  { %v1411_v19 = vsub.f32 1.5, %v1410_v18 }
 0x20f   :  { %v2183_v20 = vpop.eup %2182 }
 0x210   :  { %v1412_v21 = vmul.f32 %v2181_v14, %v1411_v19  ;;  %v1418_v22 = vmul.f32 %v2183_v20, %v1406_v15  ;;  %vm1424_vm5 = vweird.f32 %v2183_v20 }
 0x211   :  { %vm1425_vm8 = vmor %vm1423_vm7, %vm1424_vm5 }
 0x212   :  { %v1416_v24 = vsel %vm1415_vm4, %v2181_v14, %v1412_v21  ;;  %v1419_v25 = vmul.f32 %v2183_v20, %v1418_v22 }
 0x213   :  { %v1427_v27 = vmul.f32 %v1416_v24, %v1393_v1 }
 0x214   :  { %v1420_v28 = vmul.f32 0.5, %v1419_v25 }
 0x215   :  { %v1433_v29 = vmul.f32 %v2176_v23, %v1427_v27 }
 0x216   :  { %v1421_v30 = vsub.f32 1.5, %v1420_v28 }
 0x217   :  { %v1439_v31 = vadd.f32 %v2177_v26, %v1433_v29 }
 0x218   :  { %v1422_v32 = vmul.f32 %v2183_v20, %v1421_v30 }
 0x219   :  { %v1441_v33 = vpack.c.bf16 %v1439_v31, %v1439_v31 }
 0x21a   :  { %v1426_v34 = vsel %vm1425_vm8, %v2183_v20, %v1422_v32 }
 0x21b   :  { %1444 = vst.msk [vmem:[%s2728_s6] sm:$0xf] %vm1443_vm6, %v1441_v33  ;;  %v1428_v35 = vmul.f32 %v1426_v34, %v1394_v6 }
 0x21d   :  { %v1434_v36 = vmul.f32 %v2176_v23, %v1428_v35 }
 0x21f   :  { %v1440_v37 = vadd.f32 %v2177_v26, %v1434_v36 }
 0x221   :  { %v1442_v38 = vpack.c.bf16 %v1440_v37, %v1440_v37 }
 0x223   :  { %1445 = vst.msk [vmem:[%s2728_s6 + $0x4] sm:$0xf] %vm1443_vm6, %v1442_v38 }

</bundles_post_ra>
